<compile_context>
chip_gen: v6e
topology: v6e:2x2x1
jax: 0.10.0
libtpu: 0.0.40
codegen_flags: <defaults>
</compile_context>

<pallas_src>
import functools

import jax
import jax.numpy as jnp
from jax.experimental import pallas as pl
from jax.experimental.pallas import tpu as pltpu

BN_EPS = 1e-5
H1, H2 = 450, 350
LANE = 128


def _pad_up(n, m):
    return -(-n // m) * m


def _compiler_params(**kw):
    cls = getattr(pltpu, "CompilerParams", None)
    if cls is None:  # older spelling on some jax versions
        cls = getattr(pltpu, "TPUCompilerParams")
    return cls(**kw)


def _actor_kernel(x_ref, w1_ref, w2_ref, w4_ref, vec_ref, mask_ref, o_ref, *,
                  true_b, h2_p, out_p):
    """One agent's full-batch forward (agent dim squeezed out by the BlockSpecs)."""
    inv_b = 1.0 / true_b                  # true (un-padded) batch size, static
    v = vec_ref[...]                      # (5, h1_p) packed per-feature vectors (f32)
    mask = mask_ref[...]                  # (B_p, 1): 1.0 real rows, 0.0 pad rows

    def bn_relu(h, g, beta):
        # Training-mode BatchNorm (biased var) + ReLU, folded into one scale/shift.
        # Pad rows of `h` are zero (zero inputs, no bias), so the sums only see
        # real rows; the mask removes their (-mu) contribution from the variance
        # and zeroes them again before they feed the next layer's statistics.
        mu = jnp.sum(h, axis=0, keepdims=True) * inv_b
        cen = (h - mu) * mask
        var = jnp.sum(cen * cen, axis=0, keepdims=True) * inv_b   # two-pass form
        scale = jax.lax.rsqrt(var + BN_EPS) * g
        return jnp.maximum(cen * scale + beta, 0.0) * mask

    # ---- fc1 (bias cancels under batch-stat BN) + BN + relu ----
    h = jnp.dot(x_ref[...].astype(jnp.bfloat16), w1_ref[...],
                preferred_element_type=jnp.float32)
    h = bn_relu(h, v[0:1, :], v[1:2, :])

    # ---- fc2 (bias cancels under batch-stat BN) + BN + relu ----
    h = jnp.dot(h.astype(jnp.bfloat16), w2_ref[...],
                preferred_element_type=jnp.float32)
    h = bn_relu(h, v[2:3, :h2_p], v[3:4, :h2_p])

    # ---- fc4 + bias + tanh ----
    out = jnp.dot(h.astype(jnp.bfloat16), w4_ref[...],
                  preferred_element_type=jnp.float32)
    o_ref[...] = jnp.tanh(out + v[4:5, :out_p])


def _vmem_bytes_estimate(b_p, in_p, h1_p, h2_p, out_p):
    """Rough per-grid-step VMEM footprint (double-buffered blocks + f32 temps)."""
    w = 2 * 2 * (in_p * h1_p + h1_p * h2_p + h2_p * out_p) + 2 * 4 * 5 * h1_p
    io = 2 * 4 * b_p * (in_p + out_p + 1)
    act = 2 * 4 * b_p * (h1_p + h2_p)     # f32 h1/h2 + bf16 casts / temporaries
    return w + io + act + (4 << 20)       # + compiler-internal scratch headroom


def actor_forward(x, kp):
    """x: (A, B, input_dim) or (B, input_dim) float32.  kp: prepare_kernel_params()."""
    squeeze = x.ndim == 2
    if squeeze:
        x = x[None]
    A, B, in_dim = x.shape
    assert A == kp["w1"].shape[0], "agent count mismatch between x and params"

    in_p, h1_p = kp["w1"].shape[1], kp["w1"].shape[2]
    h2_p = kp["w2"].shape[2]
    out_p = kp["w4"].shape[2]
    out_dim = kp["out_dim"]

    B_p = _pad_up(B, 16)                  # full bf16 sublane packing
    # Zero-pad batch rows + input features (exact: padded w1 rows are zero and the
    # row mask keeps pad rows out of the BN statistics).
    # TODO(synk): for very long rollouts fold this pad into the kernel instead of
    # an extra wrapper-side HBM pass over x.
    if B_p != B or in_p != in_dim:
        x = jnp.pad(x, ((0, 0), (0, B_p - B), (0, in_p - in_dim)))
    row_mask = (jnp.arange(B_p) < B).astype(jnp.float32).reshape(B_p, 1)

    vmem_est = _vmem_bytes_estimate(B_p, in_p, h1_p, h2_p, out_p)
    if vmem_est > (48 << 20):
        # TODO(synk): batch-tiled path (grid over batch tiles with resident
        # weights, two-pass BN accumulating per-feature sum/sumsq in VMEM scratch
        # and staging pre-BN h1/h2 to HBM) for very large per-agent batches, so
        # VMEM stays bounded (64 MiB/TC on v7x) and batch tiles can use both cores.
        raise ValueError(
            f"per-agent batch of {B} rows needs ~{vmem_est >> 20} MiB VMEM; "
            "add the batch-tiled two-pass-BN path for this size.")
    vmem_limit = int(max(vmem_est, 24 << 20))   # explicit; < 64 MiB physical on v7x

    kernel = functools.partial(_actor_kernel, true_b=B, h2_p=h2_p, out_p=out_p)

    out = pl.pallas_call(
        kernel,
        grid=(A,),
        out_shape=jax.ShapeDtypeStruct((A, B_p, out_p), jnp.float32),
        in_specs=[
            pl.BlockSpec((None, B_p, in_p), lambda a: (a, 0, 0)),    # x
            pl.BlockSpec((None, in_p, h1_p), lambda a: (a, 0, 0)),   # w1
            pl.BlockSpec((None, h1_p, h2_p), lambda a: (a, 0, 0)),   # w2
            pl.BlockSpec((None, h2_p, out_p), lambda a: (a, 0, 0)),  # w4
            pl.BlockSpec((None, 5, h1_p), lambda a: (a, 0, 0)),      # packed vecs
            pl.BlockSpec((B_p, 1), lambda a: (0, 0)),                # row mask
        ],
        out_specs=pl.BlockSpec((None, B_p, out_p), lambda a: (a, 0, 0)),
        compiler_params=_compiler_params(
            dimension_semantics=("parallel",),
            vmem_limit_bytes=vmem_limit),
    )(x, kp["w1"], kp["w2"], kp["w4"], kp["vecs"], row_mask)

    out = out[:, :B, :out_dim]
    return out[0] if squeeze else out


def init_params(key, num_agents, input_dim, output_dim):
    """Raw (unpadded, f32) params, one independent Actor per agent, stacked on a
    leading agent axis.  nn.Linear weight (out, in) is stored transposed here as
    (in, out).  reset_parameters(): fc1/fc2 weights uniform(+-1/sqrt(out_features))
    (quirk of hidden_init reading weight.size()[0]); fc4 weights uniform(+-3e-3).
    Biases keep PyTorch's default uniform(+-1/sqrt(in_features)).  BatchNorm:
    gamma=1, beta=0 (fresh layers).  fc3/batch_norm_hidden2 are unused in forward().
    """
    def uni(k_, shape, lim):
        return jax.random.uniform(k_, shape, jnp.float32, -lim, lim)

    def one(k_):
        ks = jax.random.split(k_, 6)
        return {
            "w1": uni(ks[0], (input_dim, H1), 1.0 / float(H1) ** 0.5),
            "b1": uni(ks[1], (1, H1), 1.0 / float(input_dim) ** 0.5),
            "g1": jnp.ones((1, H1), jnp.float32),
            "beta1": jnp.zeros((1, H1), jnp.float32),
            "w2": uni(ks[2], (H1, H2), 1.0 / float(H2) ** 0.5),
            "b2": uni(ks[3], (1, H2), 1.0 / float(H1) ** 0.5),
            "g2": jnp.ones((1, H2), jnp.float32),
            "beta2": jnp.zeros((1, H2), jnp.float32),
            "w4": uni(ks[4], (H2, output_dim), 3e-3),
            "b4": uni(ks[5], (1, output_dim), 1.0 / float(H2) ** 0.5),
        }

    per = [one(k_) for k_ in jax.random.split(key, num_agents)]
    return {name: jnp.stack([p[name] for p in per]) for name in per[0]}


def prepare_kernel_params(p, input_dim, output_dim):
    """Pad to TPU-friendly shapes, cast matmul weights to bf16, pack per-feature vectors.

    Feature (N) dims padded to lane multiples of 128 (450->512, 350->384, out->128)
    so all matmul outputs and the output block stay lane-dense; fc1's K dim is
    padded only to 32 (bf16 sublane multiple; full-array blocks are exempt from the
    128-lane divisibility rule).  Weights kept bf16 with f32 accumulation; int8 is
    deliberately not used (v7x has no integer MXU path).
    """
    A = p["w1"].shape[0]
    in_p = _pad_up(max(input_dim, 1), 32)
    h1_p = _pad_up(H1, LANE)              # 512
    h2_p = _pad_up(H2, LANE)              # 384
    out_p = _pad_up(max(output_dim, 1), LANE)

    def pad3(a, rows, cols):
        return jnp.pad(a, ((0, 0), (0, rows - a.shape[1]), (0, cols - a.shape[2])))

    w1 = pad3(p["w1"], in_p, h1_p).astype(jnp.bfloat16)
    w2 = pad3(p["w2"], h1_p, h2_p).astype(jnp.bfloat16)
    w4 = pad3(p["w4"], h2_p, out_p).astype(jnp.bfloat16)

    # One packed slab per agent (kept f32):
    #   row 0: gamma1, row 1: beta1, row 2: gamma2, row 3: beta2, row 4: b4.
    # fc1/fc2 biases intentionally omitted (exactly cancelled by batch-stat BN).
    vecs = jnp.zeros((A, 5, h1_p), jnp.float32)
    vecs = vecs.at[:, 0, :H1].set(p["g1"][:, 0])
    vecs = vecs.at[:, 1, :H1].set(p["beta1"][:, 0])
    vecs = vecs.at[:, 2, :H2].set(p["g2"][:, 0])
    vecs = vecs.at[:, 3, :H2].set(p["beta2"][:, 0])
    vecs = vecs.at[:, 4, :output_dim].set(p["b4"][:, 0])

    return {"w1": w1, "w2": w2, "w4": w4, "vecs": vecs,
            "in_dim": input_dim, "out_dim": output_dim}


def actor_forward_ref(x, p):
    """Pure-JAX f32 reference with full PyTorch semantics (incl. fc1/fc2 biases),
    vmapped over the leading agent axis."""
    def bn(h, g, beta):
        mu = h.mean(0, keepdims=True)
        var = ((h - mu) ** 2).mean(0, keepdims=True)
        return (h - mu) * jax.lax.rsqrt(var + BN_EPS) * g + beta

    def single(xa, pa):
        h = jax.nn.relu(bn(xa @ pa["w1"] + pa["b1"], pa["g1"], pa["beta1"]))
        h = jax.nn.relu(bn(h @ pa["w2"] + pa["b2"], pa["g2"], pa["beta2"]))
        return jnp.tanh(h @ pa["w4"] + pa["b4"])

    return jax.vmap(single)(x, p)


if __name__ == "__main__":
    key = jax.random.PRNGKey(0)
    k_x, k_p = jax.random.split(key)

    NUM_AGENTS, B, INPUT_DIM, OUTPUT_DIM = 3, 8, 24, 2

    x = jax.random.normal(k_x, (NUM_AGENTS, B, INPUT_DIM), jnp.float32)
    raw = init_params(k_p, NUM_AGENTS, INPUT_DIM, OUTPUT_DIM)
    kp = prepare_kernel_params(raw, INPUT_DIM, OUTPUT_DIM)

    out = jax.block_until_ready(actor_forward(x, kp))

    ref = actor_forward_ref(x, raw)       # f32 reference, with fc1/fc2 biases
    assert out.shape == (NUM_AGENTS, B, OUTPUT_DIM)
    # Kernel uses bf16 matmul operands (f32 accumulate); compare with a loose tol.
    max_err = float(jnp.max(jnp.abs(out - ref)))
    assert jnp.allclose(out, ref, atol=1e-2, rtol=1e-2), (
        f"mismatch vs reference: max abs err {max_err}")

    print("KERNEL_OK")
</pallas_src>

<mosaic_0001>
module attributes {stable_mosaic.version = 11 : i64} {
  func.func @_actor_kernel(%arg0: i32, %arg1: memref<1x16x32xf32, #tpu.memory_space<vmem>>, %arg2: memref<1x32x512xbf16, #tpu.memory_space<vmem>>, %arg3: memref<1x512x384xbf16, #tpu.memory_space<vmem>>, %arg4: memref<1x384x128xbf16, #tpu.memory_space<vmem>>, %arg5: memref<1x5x512xf32, #tpu.memory_space<vmem>>, %arg6: memref<16x1xf32, #tpu.memory_space<vmem>>, %arg7: memref<1x16x128xf32, #tpu.memory_space<vmem>>) attributes {dimension_semantics = [#tpu.dimension_semantics<parallel>], iteration_bounds = array<i64: 3>, scalar_prefetch = 0 : i64, scratch_operands = 0 : i64, tpu.core_type = #tpu.core_type<tc>, window_params = [{transform_indices = @transform_0, window_bounds = array<i64: 1, 16, 32>}, {transform_indices = @transform_1, window_bounds = array<i64: 1, 32, 512>}, {transform_indices = @transform_2, window_bounds = array<i64: 1, 512, 384>}, {transform_indices = @transform_3, window_bounds = array<i64: 1, 384, 128>}, {transform_indices = @transform_4, window_bounds = array<i64: 1, 5, 512>}, {pipeline_mode = #tpu.pipeline_mode<synchronous>, transform_indices = @transform_5, window_bounds = array<i64: 16, 1>}, {transform_indices = @transform_6, window_bounds = array<i64: 1, 16, 128>}]} {
    %c0 = arith.constant 0 : index
    %c0_0 = arith.constant 0 : index
    %c0_1 = arith.constant 0 : index
    %0 = vector.load %arg5[%c0, %c0_0, %c0_1] : memref<1x5x512xf32, #tpu.memory_space<vmem>>, vector<1x5x512xf32>
    %1 = vector.shape_cast %0 : vector<1x5x512xf32> to vector<5x512xf32>
    %c0_2 = arith.constant 0 : index
    %c0_3 = arith.constant 0 : index
    %2 = vector.load %arg6[%c0_2, %c0_3] : memref<16x1xf32, #tpu.memory_space<vmem>>, vector<16x1xf32>
    %c0_4 = arith.constant 0 : index
    %c0_5 = arith.constant 0 : index
    %c0_6 = arith.constant 0 : index
    %3 = vector.load %arg1[%c0_4, %c0_5, %c0_6] : memref<1x16x32xf32, #tpu.memory_space<vmem>>, vector<1x16x32xf32>
    %4 = vector.shape_cast %3 : vector<1x16x32xf32> to vector<16x32xf32>
    %5 = arith.truncf %4 : vector<16x32xf32> to vector<16x32xbf16>
    %c0_7 = arith.constant 0 : index
    %c0_8 = arith.constant 0 : index
    %c0_9 = arith.constant 0 : index
    %6 = vector.load %arg2[%c0_7, %c0_8, %c0_9] : memref<1x32x512xbf16, #tpu.memory_space<vmem>>, vector<1x32x512xbf16>
    %7 = vector.shape_cast %6 : vector<1x32x512xbf16> to vector<32x512xbf16>
    %cst = arith.constant dense<0.000000e+00> : vector<16x512xf32>
    %8 = tpu.matmul %5, %7, %cst {dimension_numbers = #tpu.dot_dimension_numbers<[1], [0], [0], [1], [0, 0, 1, 1], [], []>} : vector<16x32xbf16>, vector<32x512xbf16>, vector<16x512xf32> -> vector<16x512xf32>
    %9 = vector.extract_strided_slice %1 {offsets = [0, 0], sizes = [1, 512], strides = [1, 1]} : vector<5x512xf32> to vector<1x512xf32>
    %10 = vector.extract_strided_slice %1 {offsets = [1, 0], sizes = [1, 512], strides = [1, 1]} : vector<5x512xf32> to vector<1x512xf32>
    %cst_10 = arith.constant dense<0.000000e+00> : vector<512xf32>
    %11 = vector.multi_reduction <add>, %8, %cst_10 [0] : vector<16x512xf32> to vector<512xf32>
    %12 = vector.shape_cast %11 : vector<512xf32> to vector<1x512xf32>
    %cst_11 = arith.constant 1.250000e-01 : f32
    %13 = vector.broadcast %cst_11 : f32 to vector<1x512xf32>
    %14 = arith.mulf %12, %13 : vector<1x512xf32>
    %15 = vector.broadcast %14 : vector<1x512xf32> to vector<16x512xf32>
    %16 = arith.subf %8, %15 : vector<16x512xf32>
    %17 = vector.broadcast %2 : vector<16x1xf32> to vector<16x512xf32>
    %18 = arith.mulf %16, %17 : vector<16x512xf32>
    %19 = arith.mulf %18, %18 : vector<16x512xf32>
    %cst_12 = arith.constant dense<0.000000e+00> : vector<512xf32>
    %20 = vector.multi_reduction <add>, %19, %cst_12 [0] : vector<16x512xf32> to vector<512xf32>
    %21 = vector.shape_cast %20 : vector<512xf32> to vector<1x512xf32>
    %cst_13 = arith.constant 1.250000e-01 : f32
    %22 = vector.broadcast %cst_13 : f32 to vector<1x512xf32>
    %23 = arith.mulf %21, %22 : vector<1x512xf32>
    %cst_14 = arith.constant 9.99999974E-6 : f32
    %24 = vector.broadcast %cst_14 : f32 to vector<1x512xf32>
    %25 = arith.addf %23, %24 : vector<1x512xf32>
    %26 = math.rsqrt %25 : vector<1x512xf32>
    %27 = arith.mulf %26, %9 : vector<1x512xf32>
    %28 = vector.broadcast %27 : vector<1x512xf32> to vector<16x512xf32>
    %29 = arith.mulf %18, %28 : vector<16x512xf32>
    %30 = vector.broadcast %10 : vector<1x512xf32> to vector<16x512xf32>
    %31 = arith.addf %29, %30 : vector<16x512xf32>
    %cst_15 = arith.constant 0.000000e+00 : f32
    %32 = vector.broadcast %cst_15 : f32 to vector<16x512xf32>
    %33 = arith.maximumf %31, %32 : vector<16x512xf32>
    %34 = vector.broadcast %2 : vector<16x1xf32> to vector<16x512xf32>
    %35 = arith.mulf %33, %34 : vector<16x512xf32>
    %36 = arith.truncf %35 : vector<16x512xf32> to vector<16x512xbf16>
    %c0_16 = arith.constant 0 : index
    %c0_17 = arith.constant 0 : index
    %c0_18 = arith.constant 0 : index
    %37 = vector.load %arg3[%c0_16, %c0_17, %c0_18] : memref<1x512x384xbf16, #tpu.memory_space<vmem>>, vector<1x512x384xbf16>
    %38 = vector.shape_cast %37 : vector<1x512x384xbf16> to vector<512x384xbf16>
    %cst_19 = arith.constant dense<0.000000e+00> : vector<16x384xf32>
    %39 = tpu.matmul %36, %38, %cst_19 {dimension_numbers = #tpu.dot_dimension_numbers<[1], [0], [0], [1], [0, 0, 1, 1], [], []>} : vector<16x512xbf16>, vector<512x384xbf16>, vector<16x384xf32> -> vector<16x384xf32>
    %40 = vector.extract_strided_slice %1 {offsets = [2, 0], sizes = [1, 384], strides = [1, 1]} : vector<5x512xf32> to vector<1x384xf32>
    %41 = vector.extract_strided_slice %1 {offsets = [3, 0], sizes = [1, 384], strides = [1, 1]} : vector<5x512xf32> to vector<1x384xf32>
    %cst_20 = arith.constant dense<0.000000e+00> : vector<384xf32>
    %42 = vector.multi_reduction <add>, %39, %cst_20 [0] : vector<16x384xf32> to vector<384xf32>
    %43 = vector.shape_cast %42 : vector<384xf32> to vector<1x384xf32>
    %cst_21 = arith.constant 1.250000e-01 : f32
    %44 = vector.broadcast %cst_21 : f32 to vector<1x384xf32>
    %45 = arith.mulf %43, %44 : vector<1x384xf32>
    %46 = vector.broadcast %45 : vector<1x384xf32> to vector<16x384xf32>
    %47 = arith.subf %39, %46 : vector<16x384xf32>
    %48 = vector.broadcast %2 : vector<16x1xf32> to vector<16x384xf32>
    %49 = arith.mulf %47, %48 : vector<16x384xf32>
    %50 = arith.mulf %49, %49 : vector<16x384xf32>
    %cst_22 = arith.constant dense<0.000000e+00> : vector<384xf32>
    %51 = vector.multi_reduction <add>, %50, %cst_22 [0] : vector<16x384xf32> to vector<384xf32>
    %52 = vector.shape_cast %51 : vector<384xf32> to vector<1x384xf32>
    %cst_23 = arith.constant 1.250000e-01 : f32
    %53 = vector.broadcast %cst_23 : f32 to vector<1x384xf32>
    %54 = arith.mulf %52, %53 : vector<1x384xf32>
    %cst_24 = arith.constant 9.99999974E-6 : f32
    %55 = vector.broadcast %cst_24 : f32 to vector<1x384xf32>
    %56 = arith.addf %54, %55 : vector<1x384xf32>
    %57 = math.rsqrt %56 : vector<1x384xf32>
    %58 = arith.mulf %57, %40 : vector<1x384xf32>
    %59 = vector.broadcast %58 : vector<1x384xf32> to vector<16x384xf32>
    %60 = arith.mulf %49, %59 : vector<16x384xf32>
    %61 = vector.broadcast %41 : vector<1x384xf32> to vector<16x384xf32>
    %62 = arith.addf %60, %61 : vector<16x384xf32>
    %cst_25 = arith.constant 0.000000e+00 : f32
    %63 = vector.broadcast %cst_25 : f32 to vector<16x384xf32>
    %64 = arith.maximumf %62, %63 : vector<16x384xf32>
    %65 = vector.broadcast %2 : vector<16x1xf32> to vector<16x384xf32>
    %66 = arith.mulf %64, %65 : vector<16x384xf32>
    %67 = arith.truncf %66 : vector<16x384xf32> to vector<16x384xbf16>
    %c0_26 = arith.constant 0 : index
    %c0_27 = arith.constant 0 : index
    %c0_28 = arith.constant 0 : index
    %68 = vector.load %arg4[%c0_26, %c0_27, %c0_28] : memref<1x384x128xbf16, #tpu.memory_space<vmem>>, vector<1x384x128xbf16>
    %69 = vector.shape_cast %68 : vector<1x384x128xbf16> to vector<384x128xbf16>
    %cst_29 = arith.constant dense<0.000000e+00> : vector<16x128xf32>
    %70 = tpu.matmul %67, %69, %cst_29 {dimension_numbers = #tpu.dot_dimension_numbers<[1], [0], [0], [1], [0, 0, 1, 1], [], []>} : vector<16x384xbf16>, vector<384x128xbf16>, vector<16x128xf32> -> vector<16x128xf32>
    %71 = vector.extract_strided_slice %1 {offsets = [4, 0], sizes = [1, 128], strides = [1, 1]} : vector<5x512xf32> to vector<1x128xf32>
    %72 = vector.broadcast %71 : vector<1x128xf32> to vector<16x128xf32>
    %73 = arith.addf %70, %72 : vector<16x128xf32>
    %74 = math.tanh %73 : vector<16x128xf32>
    %c0_30 = arith.constant 0 : index
    %c0_31 = arith.constant 0 : index
    %c0_32 = arith.constant 0 : index
    %75 = vector.load %arg7[%c0_30, %c0_31, %c0_32] : memref<1x16x128xf32, #tpu.memory_space<vmem>>, vector<1x16x128xf32>
    %76 = vector.shape_cast %75 : vector<1x16x128xf32> to vector<16x128xf32>
    %77 = vector.shape_cast %74 : vector<16x128xf32> to vector<1x16x128xf32>
    tpu.vector_store %arg7[%c0_30, %c0_31, %c0_32], %77 {strides = array<i32>} : memref<1x16x128xf32, #tpu.memory_space<vmem>>, vector<1x16x128xf32>,
    return
  }
  func.func @transform_0(%arg0: i32) -> (i32, i32, i32) {
    %c0_i32 = arith.constant 0 : i32
    %c0_i32_0 = arith.constant 0 : i32
    %c0_i32_1 = arith.constant 0 : i32
    return %arg0, %c0_i32, %c0_i32_0 : i32, i32, i32
  }
  func.func @transform_1(%arg0: i32) -> (i32, i32, i32) {
    %c0_i32 = arith.constant 0 : i32
    %c0_i32_0 = arith.constant 0 : i32
    %c0_i32_1 = arith.constant 0 : i32
    return %arg0, %c0_i32, %c0_i32_0 : i32, i32, i32
  }
  func.func @transform_2(%arg0: i32) -> (i32, i32, i32) {
    %c0_i32 = arith.constant 0 : i32
    %c0_i32_0 = arith.constant 0 : i32
    %c0_i32_1 = arith.constant 0 : i32
    return %arg0, %c0_i32, %c0_i32_0 : i32, i32, i32
  }
  func.func @transform_3(%arg0: i32) -> (i32, i32, i32) {
    %c0_i32 = arith.constant 0 : i32
    %c0_i32_0 = arith.constant 0 : i32
    %c0_i32_1 = arith.constant 0 : i32
    return %arg0, %c0_i32, %c0_i32_0 : i32, i32, i32
  }
  func.func @transform_4(%arg0: i32) -> (i32, i32, i32) {
    %c0_i32 = arith.constant 0 : i32
    %c0_i32_0 = arith.constant 0 : i32
    %c0_i32_1 = arith.constant 0 : i32
    return %arg0, %c0_i32, %c0_i32_0 : i32, i32, i32
  }
  func.func @transform_5(%arg0: i32) -> (i32, i32) {
    %c0_i32 = arith.constant 0 : i32
    %c0_i32_0 = arith.constant 0 : i32
    %c0_i32_1 = arith.constant 0 : i32
    return %c0_i32, %c0_i32_0 : i32, i32
  }
  func.func @transform_6(%arg0: i32) -> (i32, i32, i32) {
    %c0_i32 = arith.constant 0 : i32
    %c0_i32_0 = arith.constant 0 : i32
    %c0_i32_1 = arith.constant 0 : i32
    return %arg0, %c0_i32, %c0_i32_0 : i32, i32, i32
  }
}

</mosaic_0001>

<bundles_post_ra>
// kernel: tpu_custom_call.1
= control target key start
LH: loop header
LB: loop body
LE: loop exit
PB: predicated region body
PF: predicated region fallthrough
CT: control target
= control target key end

     0   :  { %s3411_s0 = inlined_call_operand.hbm [shape: f32[3,16,32], index: 0, kind: input, shape index: {}]   ;;  %s3412_s1 = inlined_call_operand.hbm [shape: bf16[3,32,512], index: 1, kind: input, shape index: {}]   ;;  %s3413_s2 = inlined_call_operand.hbm [shape: bf16[3,512,384], index: 2, kind: input, shape index: {}]   ;;  %s3414_s3 = inlined_call_operand.hbm [shape: bf16[3,384,128], index: 3, kind: input, shape index: {}]   ;;  %s3415_s4 = inlined_call_operand.vmem [shape: f32[3,5,512], index: 4, kind: input, shape index: {}]   ;;  %s3416_s5 = inlined_call_operand.vmem [shape: f32[16,1], index: 5, kind: input, shape index: {}]   ;;  %s3417_s6 = inlined_call_operand.hbm [shape: f32[3,16,128], index: 6, kind: output, shape index: {}]  }
   0x1   :  { %3421 = sst [smem:[#allocation17_spill]] %s3411_s0 }
   0x2   :  { %3422 = sst [smem:[#allocation18_spill]] %s3412_s1 }
   0x3   :  { %11 = vsyncpa [#allocation3], 0 }
   0x4   :  { %13 = vsyncpa [#allocation3 + $0x1], 0 }
   0x5   :  { %14 = vsyncpa [#allocation6], 0 }
   0x6   :  { %16 = vsyncpa [#allocation6 + $0x1], 0 }
   0x7   :  { %17 = vsyncpa [#allocation9], 0 }
   0x8   :  { %19 = vsyncpa [#allocation9 + $0x1], 0 }
   0x9   :  { %20 = vsyncpa [#allocation4], 0 }
   0xa   :  { %22 = vsyncpa [#allocation4 + $0x1], 0  ;;  %s2867_s21 = smov 0   ;;  %s2869_s22 = smov 0  }
   0xb   :  { %s2871_s23 = smov 0   ;;  %s2873_s24 = smov 0  }
   0xc LB: > { %3423 = sst [smem:[#allocation15_spill]] %s2808_s23  ;;  %s2888_s25 = sadd.s32 4294967295, %s2812_s24   ;;  %s2812_s24 = sphi %s2873_s24, %s3442_s24   ;;  %s2808_s23 = sphi %s2871_s23, %s3439_s23   ;;  %s2804_s22 = sphi %s2869_s22, %s3441_s22   ;;  %s2800_s21 = sphi %s2867_s21, %s3440_s21  }
   0xd   : > { %s2114_s26 = sadd.s32 4294967294, %s2812_s24   ;;  %s2892_s27 = sadd.s32 1, %s2812_s24  }
   0xe   : > { %s35_s28 = sadd.s32 1, %s2808_s23  ;;  %s32_s29 = ssub.s32 %s2812_s24, %s2892_s27 }
   0xf   : > { %p42_p0 = scmp.ne.s32.totalorder %s2808_s23, %s2804_s22  ;;  %p33_p1 = scmp.eq.s32.totalorder %s32_s29, 0 }
  0x10   : > { %p43_p2 = scmp.eq.s32.totalorder %s2812_s24, 0  ;;  %p48_p3 = scmp.ne.s32.totalorder %s2804_s22, %s2800_s21 }
  0x11   : > { %p49_p4 = scmp.eq.s32.totalorder %s2888_s25, 0  ;;  %p197_p7 = scmp.eq.s32.totalorder %s2888_s25, 2 }
  0x12   : > { %s2904_s30 = scalar_select %p33_p1, %s2808_s23, %s35_s28  }
  0x13   : > { %p44_p5 = por %p43_p2, %p42_p0  ;;  %p2906_p6 = por %p49_p4, %p48_p3 }
  0x14   : > { %3424 = sst [smem:[#allocation16_spill]] %s2904_s30  ;;  %p203_p8 = scmp.eq.s32.totalorder %s2114_s26, 2 }
  0x15   : > { %s3425_s7 = scalar_select %p2906_p6, 1, 0 }
  0x16   : > { %p2398_p9 = scmp.lt.s32.totalorder %s2812_s24, 3  ;;  %p2912_p10 = por %p197_p7, %p42_p0 }
  0x17   : > { %p2916_p11 = por %p203_p8, %p48_p3  ;;  %s2921_s10 = sand.u32 1, %s2808_s23  }
  0x18   : > { %s3426_s8 = scalar_select %p2912_p10, 1, 0 }
  0x19   : > { %s3427_s9 = scalar_select %p2916_p11, 1, 0 }
  0x1a   : > { %p2923_p12 = pnand %p2398_p9, %p44_p5  ;;  %s247_s12 = sand.u32 1, %s2812_s24  }
  0x1b   : > { %s2120_s13 = sshll.u32 %s2921_s10, 6  ;;  %s2267_s14 = sshll.u32 %s2812_s24, 10 }
  0x1c   : > { %s3429_s1 = sld [smem:[#allocation18_spill]]  ;;  %s251_s18 = scalar_lea.vmem [#allocation5], %s2120_s13 }
  0x1d   : > { %s258_s19 = sshll.u32 %s251_s18, 4  ;;  %s2938_s20 = scalar_lea.sflag [#allocation6], %s247_s12  ;;  %s2935_s19 = int_to_ptr.vmem [resolvable:$true] %s258_s19 }
  0x1e   : > { %p2944_p1 = pneg %p2923_p12 }
  0x22   : > { %s2933_s17 = scalar_lea.hbm %s3429_s1, %s2267_s14  ;;  %s2633_s13 = scalar_lea.hbm %s3429_s1, 3072 }
  0x23   : > { %s2628_s26 = scalar_lea.hbm %s2933_s17, 1024  ;;  %p2634_p4 = scmp.lt.s32.totalorder %s2933_s17, %s3429_s1 }
  0x24   : > { %p2629_p0 = scmp.ne.s32.totalorder %s2933_s17, %s2628_s26  ;;  %p2635_p5 = scmp.lt.s32.totalorder %s2633_s13, %s2628_s26 }
  0x26   : > { %p2631_p2 = pnand %p2944_p1, %p2629_p0  ;;  %p2636_p7 = por %p2635_p5, %p2634_p4 }
  0x28   : > { %p2632_p3 = pneg %p2631_p2 }
  0x2a   : > { %p2637_p8 = pnand %p2636_p7, %p2632_p3 }
  0x2c   : > { %2640 = shalt.err (!%p2637_p8)
}
  0x2d   : > { %s2641_s12 = scalar_lea.vmem %s2935_s19, 1024  ;;  %s2814_s18 = smov [#allocation5]  }
  0x2e   : > { %p2642_p9 = scmp.ne.s32.totalorder %s2935_s19, %s2641_s12  ;;  %s2646_s29 = sshll.u32 %s2814_s18, 4  ;;  %s2647_s29 = int_to_ptr.vmem [resolvable:$false] %s2646_s29 }
  0x2f   : > { %s2648_s14 = scalar_lea.vmem %s2647_s29, 2048  ;;  %p2649_p13 = scmp.lt.s32.totalorder %s2935_s19, %s2647_s29 }
  0x30   : > { %p2644_p0 = pnand %p2642_p9, %p2944_p1  ;;  %p2650_p11 = scmp.lt.s32.totalorder %s2648_s14, %s2641_s12 }
  0x32   : > { %p2645_p2 = pneg %p2644_p0  ;;  %p2651_p10 = por %p2650_p11, %p2649_p13 }
  0x34   : > { %p2652_p6 = pnand %p2651_p10, %p2645_p2 }
  0x36   : > { %2655 = shalt.err (!%p2652_p6)
}
  0x37   : > { %s2815_s26 = smov 256   ;;  %s2816_s13 = smov 16  }
  0x38   : > { %2387 = dma.hbm_to_vmem [thread:$0]  (!%p2923_p12), %s2933_s17, 1024, %s2935_s19, %s2938_s20, %s2815_s26, %s2815_s26, %s2816_s13  }
  0x39   : > { %p316_p3 = scmp.lt.s32.totalorder %s2812_s24, 4  ;;  %s2117_s15 = sshll.u32 %s2921_s10, 4 }
  0x3a   : > { %s2266_s16 = sshll.u32 %s2812_s24, 8  ;;  %p3431_p10 = scmp.ge.s32.totalorder %s2812_s24, 1 }
  0x3b   : > { %s3433_s0 = sld [smem:[#allocation17_spill]]  ;;  %s230_s1 = scalar_lea.vmem [#allocation2], %s2117_s15 }
  0x3c   : > { %p2972_p6 = pnand %p3431_p10, %p316_p3  ;;  %s237_s30 = sshll.u32 %s230_s1, 4  ;;  %s2981_s30 = int_to_ptr.vmem [resolvable:$true] %s237_s30 }
  0x3d   : > { %s2365_s17 = smul.u32 768, %s2921_s10  ;;  %s227_s19 = scalar_lea.sflag [#allocation3], %s2921_s10 }
  0x3e   : > { %s3432_s12 = scalar_select %p2972_p6, 1, 0 }
  0x41   : > { %s2979_s14 = scalar_lea.hbm %s3433_s0, %s2266_s16  ;;  %s2661_s18 = scalar_lea.hbm %s3433_s0, 768 }
  0x42   : > { %s2656_s26 = scalar_lea.hbm %s2979_s14, 256  ;;  %p2662_p5 = scmp.lt.s32.totalorder %s2979_s14, %s3433_s0 }
  0x43   : > { %p2657_p11 = scmp.ne.s32.totalorder %s2979_s14, %s2656_s26  ;;  %p2663_p7 = scmp.lt.s32.totalorder %s2661_s18, %s2656_s26 }
  0x45   : > { %p2659_p13 = pnand %p2657_p11, %p2944_p1  ;;  %p2664_p8 = por %p2663_p7, %p2662_p5 }
  0x47   : > { %p2660_p4 = pneg %p2659_p13 }
  0x49   : > { %p2665_p9 = pnand %p2664_p8, %p2660_p4 }
  0x4b   : > { %2668 = shalt.err (!%p2665_p9)
}
  0x4c   : > { %s2669_s1 = scalar_lea.vmem %s2981_s30, 256  ;;  %s2817_s15 = smov [#allocation2]  }
  0x4d   : > { %p2670_p0 = scmp.ne.s32.totalorder %s2981_s30, %s2669_s1  ;;  %s2674_s23 = sshll.u32 %s2817_s15, 4  ;;  %s2675_s23 = int_to_ptr.vmem [resolvable:$false] %s2674_s23 }
  0x4e   : > { %s2676_s13 = scalar_lea.vmem %s2675_s23, 512  ;;  %p2677_p10 = scmp.lt.s32.totalorder %s2981_s30, %s2675_s23 }
  0x4f   : > { %p2672_p2 = pnand %p2670_p0, %p2944_p1  ;;  %p2678_p11 = scmp.lt.s32.totalorder %s2676_s13, %s2669_s1 }
  0x51   : > { %p2673_p3 = pneg %p2672_p2  ;;  %p2679_p13 = por %p2678_p11, %p2677_p10 }
  0x53   : > { %p2680_p6 = pnand %p2679_p13, %p2673_p3 }
  0x55   : > { %2683 = shalt.err (!%p2680_p6)
}
  0x56   : > { %s2818_s26 = smov 128   ;;  %s2819_s18 = smov 8  }
  0x57   : > { %2384 = dma.hbm_to_vmem [thread:$0]  (!%p2923_p12), %s2979_s14, 256, %s2981_s30, %s227_s19, %s2818_s26, %s2818_s26, %s2819_s18  }
  0x58   : > { %s2366_s16 = smul.u32 12288, %s2812_s24  ;;  %s272_s29 = scalar_lea.vmem [#allocation7], %s2365_s17 }
  0x59   : > { %s279_s15 = sshll.u32 %s272_s29, 4  ;;  %s2689_s17 = scalar_lea.hbm %s3413_s2, 36864  ;;  %s3015_s15 = int_to_ptr.vmem [resolvable:$true] %s279_s15 }
  0x5a   : > { %s3013_s13 = scalar_lea.hbm %s3413_s2, %s2366_s16 }
  0x5b   : > { %s2684_s0 = scalar_lea.hbm %s3013_s13, 12288  ;;  %p2690_p7 = scmp.lt.s32.totalorder %s3013_s13, %s3413_s2 }
  0x5c   : > { %p2685_p6 = scmp.ne.s32.totalorder %s3013_s13, %s2684_s0  ;;  %p2691_p8 = scmp.lt.s32.totalorder %s2689_s17, %s2684_s0 }
  0x5e   : > { %p2687_p4 = pnand %p2685_p6, %p2944_p1  ;;  %p2692_p9 = por %p2691_p8, %p2690_p7 }
  0x60   : > { %p2688_p5 = pneg %p2687_p4 }
  0x62   : > { %p2693_p0 = pnand %p2692_p9, %p2688_p5 }
  0x64   : > { %2696 = shalt.err (!%p2693_p0)
}
  0x65   : > { %s2697_s18 = scalar_lea.vmem %s3015_s15, 12288  ;;  %s2820_s16 = smov [#allocation7]  }
  0x66   : > { %p2698_p2 = scmp.ne.s32.totalorder %s3015_s15, %s2697_s18  ;;  %s2702_s29 = sshll.u32 %s2820_s16, 4  ;;  %s2703_s29 = int_to_ptr.vmem [resolvable:$false] %s2702_s29 }
  0x67   : > { %s2704_s1 = scalar_lea.vmem %s2703_s29, 24576  ;;  %p2705_p11 = scmp.lt.s32.totalorder %s3015_s15, %s2703_s29 }
  0x68   : > { %p2700_p3 = pnand %p2698_p2, %p2944_p1  ;;  %p2706_p13 = scmp.lt.s32.totalorder %s2704_s1, %s2697_s18 }
  0x6a   : > { %p2701_p10 = pneg %p2700_p3  ;;  %p2707_p6 = por %p2706_p13, %p2705_p11 }
  0x6c   : > { %p2708_p4 = pnand %p2707_p6, %p2701_p10 }
  0x6e   : > { %2711 = shalt.err (!%p2708_p4)
}
  0x6f   : > { %s2821_s0 = smov 192   ;;  %s2822_s23 = smov 12  }
  0x70   : > { %2390 = dma.hbm_to_vmem [thread:$0]  (!%p2923_p12), %s3013_s13, 12288, %s3015_s15, %s2938_s20, %s2821_s0, %s2821_s0, %s2822_s23  }
  0x71   : > { %s2367_s30 = smul.u32 192, %s2921_s10  ;;  %s290_s29 = scalar_lea.sflag [#allocation9], %s2921_s10 }
  0x72   : > { %s2368_s14 = smul.u32 3072, %s2812_s24  ;;  %s2717_s13 = scalar_lea.hbm %s3414_s3, 9216 }
  0x73   : > { %s293_s18 = scalar_lea.vmem [#allocation8], %s2367_s30 }
  0x74   : > { %s3043_s26 = scalar_lea.hbm %s3414_s3, %s2368_s14  ;;  %s300_s16 = sshll.u32 %s293_s18, 4  ;;  %s3045_s16 = int_to_ptr.vmem [resolvable:$true] %s300_s16 }
  0x75   : > { %s2712_s1 = scalar_lea.hbm %s3043_s26, 3072  ;;  %p2718_p9 = scmp.lt.s32.totalorder %s3043_s26, %s3414_s3 }
  0x76   : > { %p2713_p5 = scmp.ne.s32.totalorder %s3043_s26, %s2712_s1  ;;  %p2719_p0 = scmp.lt.s32.totalorder %s2717_s13, %s2712_s1 }
  0x78   : > { %p2715_p7 = pnand %p2713_p5, %p2944_p1  ;;  %p2720_p2 = por %p2719_p0, %p2718_p9 }
  0x7a   : > { %p2716_p8 = pneg %p2715_p7 }
  0x7c   : > { %p2721_p3 = pnand %p2720_p2, %p2716_p8 }
  0x7e   : > { %2724 = shalt.err (!%p2721_p3)
}
  0x7f   : > { %s2725_s30 = scalar_lea.vmem %s3045_s16, 3072  ;;  %s2823_s14 = smov [#allocation8]  }
  0x80   : > { %p2726_p10 = scmp.ne.s32.totalorder %s3045_s16, %s2725_s30  ;;  %s2730_s17 = sshll.u32 %s2823_s14, 4  ;;  %s2731_s17 = int_to_ptr.vmem [resolvable:$false] %s2730_s17 }
  0x81   : > { %s2732_s19 = scalar_lea.vmem %s2731_s17, 6144  ;;  %p2733_p6 = scmp.lt.s32.totalorder %s3045_s16, %s2731_s17 }
  0x82   : > { %p2728_p11 = pnand %p2726_p10, %p2944_p1  ;;  %p2734_p4 = scmp.lt.s32.totalorder %s2732_s19, %s2725_s30 }
  0x84   : > { %p2729_p13 = pneg %p2728_p11  ;;  %p2735_p5 = por %p2734_p4, %p2733_p6 }
  0x86   : > { %p2736_p7 = pnand %p2735_p5, %p2729_p13 }
  0x88   : > { %2739 = shalt.err (!%p2736_p7)
}
  0x89   : > { %s2824_s18 = smov 64   ;;  %s2825_s1 = smov 4  }
  0x8a   : > { %2393 = dma.hbm_to_vmem [thread:$0]  (!%p2923_p12), %s3043_s26, 3072, %s3045_s16, %s290_s29, %s2824_s18, %s2824_s18, %s2825_s1  }
  0x8b   : > { %p3434_p1 = scmp.ne.s32.totalorder %s3432_s12, 0 }
  0x8c   : > { %s3073_s28 = sand.u32 (!%p3434_p1), 1, %s2804_s22   ;;  %p3435_p8 = scmp.ne.s32.totalorder (!%p3434_p1), %s3425_s7, 0 }
  0x8d   : > { %320 = sbr.rel (%p3434_p1) target bundleno = 964 (0x3c4), region = 44  ;;  %s2126_s20 = sshll.u32 (!%p3434_p1), %s3073_s28, 4 }
  0x8e   : > { %s323_s15 = scalar_lea.sflag (!%p3434_p1), [#allocation3], %s3073_s28  ;;  %s3079_s13 = scalar_lea.vmem (!%p3434_p1), [#allocation2], %s2126_s20 }
  0x92   : > { %2783 = dma.done.wait (%p3435_p8), %s323_s15, 256  }
  0x93   : > { %2785 = vsyncadd (%p3435_p8), %s323_s15, 4294967040  ;;  %s331_s10 = sand.u32 1, %s2888_s25   ;;  %s2127_s11 = sshll.u32 %s3073_s28, 6 }
  0x94   : > { %s332_s12 = scalar_lea.sflag [#allocation6], %s331_s10  ;;  %s335_s26 = scalar_lea.vmem [#allocation5], %s2127_s11 }
  0x95   : > { %2787 = dma.done.wait (%p3435_p8), %s332_s12, 13312  }
  0x96   : > { %2789 = vsyncadd (%p3435_p8), %s332_s12, 4294953984  ;;  %s2369_s16 = smul.u32 768, %s3073_s28  ;;  %s350_s23 = scalar_lea.sflag [#allocation9], %s3073_s28 }
  0x97   : > { %s2370_s29 = smul.u32 192, %s3073_s28 }
  0x98   : > { %s3093_s0 = scalar_lea.vmem [#allocation7], %s2369_s16 }
  0x99   : > { %s3096_s30 = scalar_lea.vmem [#allocation8], %s2370_s29 }
  0x9a   : > { %2791 = dma.done.wait (%p3435_p8), %s350_s23, 3072  }
  0x9b   : > { %2793 = vsyncadd (%p3435_p8), %s350_s23, 4294964224  ;;  %v2826_v0 = vmov 0   ;;  %v2446_v1 = vld [vmem:[%s335_s26 + $0x24] ss:$16 sps:$4 sm:$0xff]   ;;  %v2448_v2 = vld [vmem:[%s335_s26 + $0x2c] ss:$16 sps:$4 sm:$0xff]  }
  0x9c   : > { %501 = vmatprep.mubr.bf16.mxu0 %v2826_v0  ;;  %544 = vmatprep.mubr.bf16.mxu1 %v2826_v0  ;;  %v2450_v3 = vld [vmem:[%s335_s26 + $0x20] ss:$16 sps:$4 sm:$0xff]   ;;  %v2451_v4 = vld [vmem:[%s335_s26 + $0x28] ss:$16 sps:$4 sm:$0xff]   ;;  %v2452_v5 = vld [vmem:[%s335_s26 + $0x4] ss:$16 sps:$4 sm:$0xff]  }
  0x9d   : > { %2445 = vset.pattern.permute.xlu0 %v2826_v0  ;;  %481 = vmatprep.subr.bf16.mxu0 %v2446_v1  ;;  %v2454_v6 = vld [vmem:[%s335_s26 + $0xc] ss:$16 sps:$4 sm:$0xff]   ;;  %v2456_v7 = vld [vmem:[%s335_s26] ss:$16 sps:$4 sm:$0xff]   ;;  %v2457_v8 = vld [vmem:[%s335_s26 + $0x8] ss:$16 sps:$4 sm:$0xff]  }
  0x9e   : > { %524 = vmatprep.subr.bf16.mxu1 %v2448_v2  ;;  %482 = vmatpush1.bf16.msra.mxu0 %v2450_v3  ;;  %v414_v9 = vld [vmem:[%s3079_s13] sm:$0xff]  ;;  %v415_v10 = vld [vmem:[%s3079_s13 + $0x8] sm:$0xff]  ;;  %vm465_vm0 = vcmask 261120   ;;  %p402_p12 = scmp.lt.s32.totalorder %s2888_s25, 2  ;;  %vm2828_vm1 = vmmov 0   ;;  %s2269_s11 = sshll.u32 %s2888_s25, 8 }
  0x9f   : > { %525 = vmatpush1.bf16.msra.mxu1 %v2451_v4  ;;  %483 = vmatprep.subr.bf16.mxu0 %v2452_v5  ;;  %v412_v11 = vld [vmem:[%s3416_s5] sm:$0xff]  ;;  %v416_v12 = vpack.c.bf16 %v415_v10, %v414_v9  ;;  %v413_v13 = vld [vmem:[%s3416_s5 + $0x8] sm:$0xff]  ;;  %v2464_v20 = vld [vmem:[%s3093_s0 + $0x90] ss:$12 sps:$4 sm:$0xff]   ;;  %s401_s12 = scalar_lea.vmem [#allocation10], %s2126_s20  ;;  %s1950_s23 = scalar_lea.sflag [#allocation4], %s3073_s28 }
  0xa0   : > { %526 = vmatprep.subr.bf16.mxu1 %v2454_v6  ;;  %597 = vperm.xlu0 %2445, %v412_v11   ;;  %v2460_v14 = vld [vmem:[%s3093_s0 + $0xac] ss:$12 sps:$4 sm:$0xff]   ;;  %v2458_v16 = vld [vmem:[%s3093_s0 + $0xa8] ss:$12 sps:$4 sm:$0xff]   ;;  %v2467_v21 = vld [vmem:[%s3093_s0 + $0x210] ss:$12 sps:$4 sm:$0xff]  }
  0xa1   : > { %v2463_v15 = vld [vmem:[%s3093_s0 + $0x22c] ss:$12 sps:$4 sm:$0xff]   ;;  %v2461_v17 = vld [vmem:[%s3093_s0 + $0x228] ss:$12 sps:$4 sm:$0xff]   ;;  %v2478_v26 = vld [vmem:[%s3093_s0 + $0x64] ss:$12 sps:$4 sm:$0xff]  }
  0xa2   : > { %484 = vmatpush1.bf16.msra.mxu0 %v2456_v7  ;;  %v2466_v18 = vld [vmem:[%s3093_s0 + $0x94] ss:$12 sps:$4 sm:$0xff]   ;;  %v2472_v22 = vld [vmem:[%s3093_s0 + $0x7c] ss:$12 sps:$4 sm:$0xff]   ;;  %v2470_v24 = vld [vmem:[%s3093_s0 + $0x78] ss:$12 sps:$4 sm:$0xff]  }
  0xa3   : > { %527 = vmatpush1.bf16.msra.mxu1 %v2457_v8  ;;  %1373 = vmatprep.subr.bf16.mxu0 %v2460_v14  ;;  %v2469_v19 = vld [vmem:[%s3093_s0 + $0x214] ss:$12 sps:$4 sm:$0xff]   ;;  %v2475_v23 = vld [vmem:[%s3093_s0 + $0x1fc] ss:$12 sps:$4 sm:$0xff]   ;;  %v2473_v25 = vld [vmem:[%s3093_s0 + $0x1f8] ss:$12 sps:$4 sm:$0xff]  }
  0xa4   : > { %602 = vperm.xlu0 %2445, %v413_v13   ;;  %1416 = vmatprep.subr.bf16.mxu1 %v2463_v15  ;;  %v2481_v27 = vld [vmem:[%s3093_s0 + $0x1e4] ss:$12 sps:$4 sm:$0xff]   ;;  %v2476_v28 = vld [vmem:[%s3093_s0 + $0x60] ss:$12 sps:$4 sm:$0xff]   ;;  %v2482_v31 = vld [vmem:[%s3093_s0 + $0x48] ss:$12 sps:$4 sm:$0xff]  }
  0xa5   : > { %2139 = vmatmul.mubr.msk.bf16.vlgmr.msra.gmra.mxu0 %vm465_vm0, %v416_v12  ;;  %v2479_v29 = vld [vmem:[%s3093_s0 + $0x1e0] ss:$12 sps:$4 sm:$0xff]   ;;  %v2485_v32 = vld [vmem:[%s3093_s0 + $0x1c8] ss:$12 sps:$4 sm:$0xff]   ;;  %v2488_v36 = vld [vmem:[%s3093_s0 + $0x30] ss:$12 sps:$4 sm:$0xff]  }
  0xa6   : > { %2140 = vmatmul.mubr.msk.bf16.vlgmr.msra.gmra.mxu1 %vm465_vm0, %v416_v12  ;;  %1374 = vmatpush1.bf16.msra.mxu0 %v2458_v16  ;;  %v2484_v30 = vld [vmem:[%s3093_s0 + $0x4c] ss:$12 sps:$4 sm:$0xff]   ;;  %v2490_v34 = vld [vmem:[%s3093_s0 + $0x34] ss:$12 sps:$4 sm:$0xff]   ;;  %v2491_v37 = vld [vmem:[%s3093_s0 + $0x1b0] ss:$12 sps:$4 sm:$0xff]  }
  0xa7   : > { %1417 = vmatpush1.bf16.msra.mxu1 %v2461_v17  ;;  %1375 = vmatprep.subr.bf16.mxu0 %v2466_v18  ;;  %v2487_v33 = vld [vmem:[%s3093_s0 + $0x1cc] ss:$12 sps:$4 sm:$0xff]   ;;  %v2493_v35 = vld [vmem:[%s3093_s0 + $0x1b4] ss:$12 sps:$4 sm:$0xff]   ;;  %v2496_v38 = vld [vmem:[%s3093_s0 + $0x1c] ss:$12 sps:$4 sm:$0xff]  }
  0xa8   : > { %1418 = vmatprep.subr.bf16.mxu1 %v2469_v19  ;;  %v2499_v39 = vld [vmem:[%s3093_s0 + $0x19c] ss:$12 sps:$4 sm:$0xff]   ;;  %v2494_v40 = vld [vmem:[%s3093_s0 + $0x18] ss:$12 sps:$4 sm:$0xff]   ;;  %v2500_v44 = vld [vmem:[%s3093_s0] ss:$12 sps:$4 sm:$0xff]  }
  0xa9   : > { %v2497_v41 = vld [vmem:[%s3093_s0 + $0x198] ss:$12 sps:$4 sm:$0xff]   ;;  %v2503_v45 = vld [vmem:[%s3093_s0 + $0x180] ss:$12 sps:$4 sm:$0xff]   ;;  %v2506_v48 = vld [vmem:[%s3093_s0 + $0x168] ss:$12 sps:$4 sm:$0xff]  }
  0xaa   : > { %1376 = vmatpush1.bf16.msra.mxu0 %v2464_v20  ;;  %v2502_v42 = vld [vmem:[%s3093_s0 + $0x4] ss:$12 sps:$4 sm:$0xff]   ;;  %v2508_v46 = vld [vmem:[%s3093_s0 + $0x16c] ss:$12 sps:$4 sm:$0xff]   ;;  %v2509_v49 = vld [vmem:[%s3093_s0 + $0x2e8] ss:$12 sps:$4 sm:$0xff]  }
  0xab   : > { %1419 = vmatpush1.bf16.msra.mxu1 %v2467_v21  ;;  %1377 = vmatprep.subr.bf16.mxu0 %v2472_v22  ;;  %v2505_v43 = vld [vmem:[%s3093_s0 + $0x184] ss:$12 sps:$4 sm:$0xff]   ;;  %v2511_v47 = vld [vmem:[%s3093_s0 + $0x2ec] ss:$12 sps:$4 sm:$0xff]   ;;  %v2514_v50 = vld [vmem:[%s3093_s0 + $0x154] ss:$12 sps:$4 sm:$0xff]  }
  0xac   : > { %1420 = vmatprep.subr.bf16.mxu1 %v2475_v23  ;;  %v2517_v51 = vld [vmem:[%s3093_s0 + $0x2d4] ss:$12 sps:$4 sm:$0xff]   ;;  %v2512_v52 = vld [vmem:[%s3093_s0 + $0x150] ss:$12 sps:$4 sm:$0xff]   ;;  %v2518_v56 = vld [vmem:[%s3093_s0 + $0x138] ss:$12 sps:$4 sm:$0xff]  }
  0xad   : > { %v2515_v53 = vld [vmem:[%s3093_s0 + $0x2d0] ss:$12 sps:$4 sm:$0xff]   ;;  %v2521_v57 = vld [vmem:[%s3093_s0 + $0x2b8] ss:$12 sps:$4 sm:$0xff]   ;;  %v2524_v60 = vld [vmem:[%s3093_s0 + $0x120] ss:$12 sps:$4 sm:$0xff]  }
  0xae   : > { %1378 = vmatpush1.bf16.msra.mxu0 %v2470_v24  ;;  %v2520_v54 = vld [vmem:[%s3093_s0 + $0x13c] ss:$12 sps:$4 sm:$0xff]   ;;  %v2526_v58 = vld [vmem:[%s3093_s0 + $0x124] ss:$12 sps:$4 sm:$0xff]   ;;  %v2527_v61 = vld [vmem:[%s3093_s0 + $0x2a0] ss:$12 sps:$4 sm:$0xff]  }
  0xaf   : > { %1421 = vmatpush1.bf16.msra.mxu1 %v2473_v25  ;;  %1379 = vmatprep.subr.bf16.mxu0 %v2478_v26  ;;  %v2523_v55 = vld [vmem:[%s3093_s0 + $0x2bc] ss:$12 sps:$4 sm:$0xff]   ;;  %v2529_v59 = vld [vmem:[%s3093_s0 + $0x2a4] ss:$12 sps:$4 sm:$0xff]   ;;  %v2532_v62 = vld [vmem:[%s3093_s0 + $0x10c] ss:$12 sps:$4 sm:$0xff]  }
  0xb0   : > { %1422 = vmatprep.subr.bf16.mxu1 %v2481_v27  ;;  %v2535_v63 = vld [vmem:[%s3093_s0 + $0x28c] ss:$12 sps:$4 sm:$0xff]   ;;  %v2530_v0 = vld [vmem:[%s3093_s0 + $0x108] ss:$12 sps:$4 sm:$0xff]   ;;  %v2536_v4 = vld [vmem:[%s3093_s0 + $0xf0] ss:$12 sps:$4 sm:$0xff]  }
  0xb1   : > { %v2533_v1 = vld [vmem:[%s3093_s0 + $0x288] ss:$12 sps:$4 sm:$0xff]   ;;  %v2539_v5 = vld [vmem:[%s3093_s0 + $0x270] ss:$12 sps:$4 sm:$0xff]   ;;  %v2542_v8 = vld [vmem:[%s3093_s0 + $0xd8] ss:$12 sps:$4 sm:$0xff]  }
  0xb2   : > { %1380 = vmatpush1.bf16.msra.mxu0 %v2476_v28  ;;  %v2538_v2 = vld [vmem:[%s3093_s0 + $0xf4] ss:$12 sps:$4 sm:$0xff]   ;;  %v2544_v6 = vld [vmem:[%s3093_s0 + $0xdc] ss:$12 sps:$4 sm:$0xff]   ;;  %v2545_v9 = vld [vmem:[%s3093_s0 + $0x258] ss:$12 sps:$4 sm:$0xff]  }
  0xb3   : > { %1423 = vmatpush1.bf16.msra.mxu1 %v2479_v29  ;;  %1381 = vmatprep.subr.bf16.mxu0 %v2484_v30  ;;  %v2541_v3 = vld [vmem:[%s3093_s0 + $0x274] ss:$12 sps:$4 sm:$0xff]   ;;  %v2547_v7 = vld [vmem:[%s3093_s0 + $0x25c] ss:$12 sps:$4 sm:$0xff]   ;;  %v2550_v10 = vld [vmem:[%s3093_s0 + $0xc4] ss:$12 sps:$4 sm:$0xff]  }
  0xb4   : > { %1424 = vmatprep.subr.bf16.mxu1 %v2487_v33  ;;  %v2553_v11 = vld [vmem:[%s3093_s0 + $0x244] ss:$12 sps:$4 sm:$0xff]   ;;  %v2548_v12 = vld [vmem:[%s3093_s0 + $0xc0] ss:$12 sps:$4 sm:$0xff]   ;;  %s403_s18 = scalar_select %p402_p12, %s2888_s25, 2 }
  0xb5   : > { %v2551_v13 = vld [vmem:[%s3093_s0 + $0x240] ss:$12 sps:$4 sm:$0xff]   ;;  %v2554_v14 = vld [vmem:[%s3093_s0 + $0x170] ss:$12 sps:$4 sm:$0xff]   ;;  %s1963_s26 = sshll.u32 %s401_s12, 4  ;;  %p3436_p0 = scmp.ne.s32.totalorder %s3426_s8, 0  ;;  %s3369_s26 = int_to_ptr.vmem [resolvable:$true] %s1963_s26 }
  0xb6   : > { %1382 = vmatpush1.bf16.msra.mxu0 %v2482_v31  ;;  %v2555_v15 = vld [vmem:[%s3093_s0 + $0x2f0] ss:$12 sps:$4 sm:$0xff]   ;;  %s2268_s1 = sshll.u32 %s403_s18, 5  ;;  %s2829_s25 = smov [#allocation10]  }
  0xb7   : > { %1425 = vmatpush1.bf16.msra.mxu1 %v2485_v32  ;;  %1383 = vmatprep.subr.bf16.mxu0 %v2490_v34  ;;  %s406_s10 = scalar_lea.vmem %s3415_s4, %s2268_s1  ;;  %s2744_s20 = sshll.u32 %s2829_s25, 4  ;;  %s2745_s20 = int_to_ptr.vmem [resolvable:$false] %s2744_s20 }
  0xb8   : > { %1426 = vmatprep.subr.bf16.mxu1 %v2493_v35  ;;  %s2746_s7 = scalar_lea.vmem %s2745_s20, 512  ;;  %p2747_p10 = scmp.lt.s32.totalorder %s3369_s26, %s2745_s20 }
  0xba   : > { %1384 = vmatpush1.bf16.msra.mxu0 %v2488_v36 }
  0xbb   : > { %1427 = vmatpush1.bf16.msra.mxu1 %v2491_v37  ;;  %1385 = vmatprep.subr.bf16.mxu0 %v2496_v38 }
  0xbc   : > { %1428 = vmatprep.subr.bf16.mxu1 %v2499_v39 }
  0xbe   : > { %1386 = vmatpush1.bf16.msra.mxu0 %v2494_v40 }
  0xbf   : > { %1429 = vmatpush1.bf16.msra.mxu1 %v2497_v41  ;;  %1387 = vmatprep.subr.bf16.mxu0 %v2502_v42 }
  0xc0   : > { %1430 = vmatprep.subr.bf16.mxu1 %v2505_v43 }
  0xc2   : > { %1388 = vmatpush1.bf16.msra.mxu0 %v2500_v44 }
  0xc3   : > { %1431 = vmatpush1.bf16.msra.mxu1 %v2503_v45  ;;  %1389 = vmatprep.subr.bf16.mxu0 %v2508_v46 }
  0xc4   : > { %1432 = vmatprep.subr.bf16.mxu1 %v2511_v47 }
  0xc6   : > { %1390 = vmatpush2.bf16.msra.mxu0 %v2506_v48 }
  0xc7   : > { %1433 = vmatpush2.bf16.msra.mxu1 %v2509_v49  ;;  %1391 = vmatprep.subr.bf16.mxu0 %v2514_v50 }
  0xc8   : > { %1434 = vmatprep.subr.bf16.mxu1 %v2517_v51 }
  0xca   : > { %1392 = vmatpush2.bf16.msra.mxu0 %v2512_v52 }
  0xcb   : > { %1435 = vmatpush2.bf16.msra.mxu1 %v2515_v53  ;;  %1393 = vmatprep.subr.bf16.mxu0 %v2520_v54 }
  0xcc   : > { %1436 = vmatprep.subr.bf16.mxu1 %v2523_v55 }
  0xce   : > { %1394 = vmatpush2.bf16.msra.mxu0 %v2518_v56 }
  0xcf   : > { %1437 = vmatpush2.bf16.msra.mxu1 %v2521_v57  ;;  %1395 = vmatprep.subr.bf16.mxu0 %v2526_v58 }
  0xd0   : > { %1438 = vmatprep.subr.bf16.mxu1 %v2529_v59 }
  0xd2   : > { %1396 = vmatpush2.bf16.msra.mxu0 %v2524_v60 }
  0xd3   : > { %1439 = vmatpush2.bf16.msra.mxu1 %v2527_v61  ;;  %1397 = vmatprep.subr.bf16.mxu0 %v2532_v62 }
  0xd4   : > { %1440 = vmatprep.subr.bf16.mxu1 %v2535_v63 }
  0xd6   : > { %1398 = vmatpush2.bf16.msra.mxu0 %v2530_v0 }
  0xd7   : > { %1441 = vmatpush2.bf16.msra.mxu1 %v2533_v1  ;;  %1399 = vmatprep.subr.bf16.mxu0 %v2538_v2 }
  0xd8   : > { %1442 = vmatprep.subr.bf16.mxu1 %v2541_v3 }
  0xda   : > { %1400 = vmatpush2.bf16.msra.mxu0 %v2536_v4 }
  0xdb   : > { %1443 = vmatpush2.bf16.msra.mxu1 %v2539_v5  ;;  %1401 = vmatprep.subr.bf16.mxu0 %v2544_v6 }
  0xdc   : > { %1444 = vmatprep.subr.bf16.mxu1 %v2547_v7 }
  0xde   : > { %1402 = vmatpush2.bf16.msra.mxu0 %v2542_v8 }
  0xdf   : > { %1445 = vmatpush2.bf16.msra.mxu1 %v2545_v9  ;;  %1403 = vmatprep.subr.bf16.mxu0 %v2550_v10 }
  0xe0   : > { %1446 = vmatprep.subr.bf16.mxu1 %v2553_v11 }
  0xe2   : > { %1404 = vmatpush2.bf16.msra.mxu0 %v2548_v12 }
  0xe3   : > { %1447 = vmatpush2.bf16.msra.mxu1 %v2551_v13  ;;  %2270 = vmatprep.subr.bf16.mxu0 %v2554_v14 }
  0xe4   : > { %2292 = vmatprep.subr.bf16.mxu1 %v2555_v15 }
 0x11b   : > { %v3176_v46 = vpop.permute.xlu0 %597 }
 0x11f   : > { %v3178_v61 = vpop.permute.xlu0 %602 }
 0x165   : > { %v503_v16 = vpop.f32.mrf.mxu0 }
 0x166   : > { %v546_v17 = vpop.f32.mrf.mxu1 }
 0x167   : > { %v505_v18 = vpop.f32.mrf.mxu0 }
 0x168   : > { %v548_v19 = vpop.f32.mrf.mxu1 }
 0x169   : > { %v507_v20 = vpop.f32.mrf.mxu0 }
 0x16a   : > { %v550_v21 = vpop.f32.mrf.mxu1  ;;  %v555_v22 = vadd.f32 %v507_v20, %v503_v16 }
 0x16b   : > { %v569_v23 = vadd.f32 %v550_v21, %v546_v17  ;;  %v509_v24 = vpop.f32.mrf.mxu0 }
 0x16c   : > { %v552_v25 = vpop.f32.mrf.mxu1  ;;  %v556_v26 = vrot.slane %v555_v22, 4  ;;  %v562_v28 = vadd.f32 %v509_v24, %v505_v18 }
 0x16d   : > { %v570_v27 = vrot.slane %v569_v23, 4  ;;  %v576_v29 = vadd.f32 %v552_v25, %v548_v19 }
 0x16e   : > { %v557_v30 = vadd.f32 %v556_v26, %v555_v22  ;;  %v563_v32 = vrot.slane %v562_v28, 4 }
 0x16f   : > { %v571_v31 = vadd.f32 %v570_v27, %v569_v23  ;;  %v577_v33 = vrot.slane %v576_v29, 4 }
 0x170   : > { %v558_v34 = vrot.slane %v557_v30, 2  ;;  %v564_v36 = vadd.f32 %v563_v32, %v562_v28 }
 0x171   : > { %v572_v35 = vrot.slane %v571_v31, 2  ;;  %v578_v37 = vadd.f32 %v577_v33, %v576_v29 }
 0x172   : > { %v559_v38 = vadd.f32 %v558_v34, %v557_v30  ;;  %v565_v40 = vrot.slane %v564_v36, 2 }
 0x173   : > { %v573_v39 = vadd.f32 %v572_v35, %v571_v31  ;;  %v579_v41 = vrot.slane %v578_v37, 2 }
 0x174   : > { %v560_v42 = vrot.slane %v559_v38, 1  ;;  %v566_v44 = vadd.f32 %v565_v40, %v564_v36 }
 0x175   : > { %v574_v43 = vrot.slane %v573_v39, 1  ;;  %v580_v45 = vadd.f32 %v579_v41, %v578_v37 }
 0x176   : > { %v561_v47 = vadd.f32 %v560_v42, %v559_v38  ;;  %v567_v49 = vrot.slane %v566_v44, 1 }
 0x177   : > { %v575_v48 = vadd.f32 %v574_v43, %v573_v39  ;;  %v581_v50 = vrot.slane %v580_v45, 1 }
 0x178   : > { %v583_v51 = vmul.f32 0.125, %v561_v47  ;;  %v568_v53 = vadd.f32 %v567_v49, %v566_v44 }
 0x179   : > { %v585_v52 = vmul.f32 0.125, %v575_v48  ;;  %v582_v54 = vadd.f32 %v581_v50, %v580_v45 }
 0x17a   : > { %v587_v55 = vsub.f32 %v503_v16, %v583_v51  ;;  %v591_v56 = vsub.f32 %v507_v20, %v583_v51  ;;  %v584_v59 = vmul.f32 0.125, %v568_v53 }
 0x17b   : > { %v589_v57 = vsub.f32 %v546_v17, %v585_v52  ;;  %v593_v58 = vsub.f32 %v550_v21, %v585_v52  ;;  %v586_v60 = vmul.f32 0.125, %v582_v54 }
 0x17c   : > { %v3181_v62 = vmul.f32 %v3176_v46, %v587_v55  ;;  %v3184_v63 = vmul.f32 %v3178_v61, %v591_v56  ;;  %v588_v2 = vsub.f32 %v505_v18, %v584_v59  ;;  %v592_v3 = vsub.f32 %v509_v24, %v584_v59 }
 0x17d   : > { %v3187_v0 = vmul.f32 %v3176_v46, %v589_v57  ;;  %v3190_v1 = vmul.f32 %v3178_v61, %v593_v58  ;;  %v590_v4 = vsub.f32 %v548_v19, %v586_v60  ;;  %v594_v5 = vsub.f32 %v552_v25, %v586_v60  ;;  %v3227_v57 = vld [vmem:[%s406_s10] sm:$0x1f]  ;;  %v3231_v60 = vld [vmem:[%s406_s10 + $0x10] sm:$0x1f] }
 0x17e   : > { %v613_v6 = vmul.f32 %v3181_v62, %v3181_v62  ;;  %v617_v7 = vmul.f32 %v3184_v63, %v3184_v63  ;;  %v3201_v10 = vmul.f32 %v3176_v46, %v588_v2  ;;  %v3204_v11 = vmul.f32 %v3178_v61, %v592_v3 }
 0x17f   : > { %v615_v8 = vmul.f32 %v3187_v0, %v3187_v0  ;;  %v619_v9 = vmul.f32 %v3190_v1, %v3190_v1  ;;  %v3207_v12 = vmul.f32 %v3176_v46, %v590_v4  ;;  %v3210_v13 = vmul.f32 %v3178_v61, %v594_v5  ;;  %v3233_v4 = vld [vmem:[%s406_s10 + $0x8] sm:$0x1f] }
 0x180   : > { %v621_v14 = vadd.f32 %v617_v7, %v613_v6  ;;  %v614_v16 = vmul.f32 %v3201_v10, %v3201_v10  ;;  %v618_v17 = vmul.f32 %v3204_v11, %v3204_v11  ;;  %v665_v55 = vlaneseq  ;;  %v411_v6 = vld [vmem:[%s406_s10 + $0x18] sm:$0x1f] }
 0x181   : > { %v635_v15 = vadd.f32 %v619_v9, %v615_v8  ;;  %v616_v18 = vmul.f32 %v3207_v12, %v3207_v12  ;;  %v620_v19 = vmul.f32 %v3210_v13, %v3210_v13 }
 0x182   : > { %v622_v20 = vrot.slane %v621_v14, 4  ;;  %v628_v22 = vadd.f32 %v618_v17, %v614_v16  ;;  %v3225_v56 = vshrl.u32 %v665_v55, 7  ;;  %v2558_v55 = vld [vmem:[%s3093_s0 + $0x158] ss:$12 sps:$4 sm:$0xff]  }
 0x183   : > { %v636_v21 = vrot.slane %v635_v15, 4  ;;  %v642_v23 = vadd.f32 %v620_v19, %v616_v18 }
 0x184   : > { %v623_v24 = vadd.f32 %v622_v20, %v621_v14  ;;  %v629_v26 = vrot.slane %v628_v22, 4  ;;  %v667_v58 = vsub.s32 0, %v3225_v56  ;;  %v691_v59 = vsub.s32 1, %v3225_v56 }
 0x185   : > { %v637_v25 = vadd.f32 %v636_v21, %v635_v15  ;;  %v643_v27 = vrot.slane %v642_v23, 4 }
 0x186   : > { %v624_v28 = vrot.slane %v623_v24, 2  ;;  %v630_v30 = vadd.f32 %v629_v26, %v628_v22  ;;  %v692_v14 = vrot.slane %v3227_v57, %v691_v59  ;;  %v700_v18 = vrot.slane %v3231_v60, %v691_v59 }
 0x187   : > { %v638_v29 = vrot.slane %v637_v25, 2  ;;  %v644_v31 = vadd.f32 %v643_v27, %v642_v23  ;;  %v696_v23 = vrot.slane %v3233_v4, %v691_v59  ;;  %v704_v27 = vrot.slane %v411_v6, %v691_v59  ;;  %v2560_v59 = vld [vmem:[%s3093_s0 + $0x98] ss:$12 sps:$4 sm:$0xff]  }
 0x188   : > { %v625_v32 = vadd.f32 %v624_v28, %v623_v24  ;;  %v631_v34 = vrot.slane %v630_v30, 2 }
 0x189   : > { %v639_v33 = vadd.f32 %v638_v29, %v637_v25  ;;  %v645_v35 = vrot.slane %v644_v31, 2 }
 0x18a   : > { %v626_v36 = vrot.slane %v625_v32, 1  ;;  %v632_v38 = vadd.f32 %v631_v34, %v630_v30 }
 0x18b   : > { %v640_v37 = vrot.slane %v639_v33, 1  ;;  %v646_v39 = vadd.f32 %v645_v35, %v644_v31 }
 0x18c   : > { %v627_v40 = vadd.f32 %v626_v36, %v625_v32  ;;  %v633_v42 = vrot.slane %v632_v38, 1 }
 0x18d   : > { %v641_v41 = vadd.f32 %v640_v37, %v639_v33  ;;  %v647_v43 = vrot.slane %v646_v39, 1 }
 0x18e   : > { %v649_v44 = vmul.f32 0.125, %v627_v40  ;;  %v634_v47 = vadd.f32 %v633_v42, %v632_v38 }
 0x18f   : > { %v651_v45 = vmul.f32 0.125, %v641_v41  ;;  %v648_v48 = vadd.f32 %v647_v43, %v646_v39 }
 0x190   : > { %v653_v49 = vadd.f32 1e-05, %v649_v44  ;;  %v650_v51 = vmul.f32 0.125, %v634_v47 }
 0x191   : > { %v655_v50 = vadd.f32 1e-05, %v651_v45  ;;  %v652_v52 = vmul.f32 0.125, %v648_v48 }
 0x192   : > { %2610 = vrsqrt.f32 %v653_v49  ;;  %v654_v53 = vadd.f32 1e-05, %v650_v51 }
 0x193   : > { %v656_v54 = vadd.f32 1e-05, %v652_v52  ;;  %2612 = vrsqrt.f32 %v655_v50  ;;  %v2556_v50 = vld [vmem:[%s3093_s0 + $0xb0] ss:$12 sps:$4 sm:$0xff]  }
 0x194   : > { %2614 = vrsqrt.f32 %v654_v53  ;;  %v2557_v53 = vld [vmem:[%s3093_s0 + $0x230] ss:$12 sps:$4 sm:$0xff]  }
 0x195   : > { %2616 = vrsqrt.f32 %v656_v54 }
 0x19f   : > { %v2611_v2 = vpop.eup %2610 }
 0x1a0   : > { %v2613_v3 = vpop.eup %2612  ;;  %v661_v5 = vmul.f32 %v2611_v2, %v3227_v57  ;;  %v2561_v2 = vld [vmem:[%s3093_s0 + $0x218] ss:$12 sps:$4 sm:$0xff]  }
 0x1a1   : > { %v663_v7 = vmul.f32 %v2613_v3, %v3231_v60  ;;  %v2615_v8 = vpop.eup %2614  ;;  %v2562_v3 = vld [vmem:[%s3093_s0 + $0x140] ss:$12 sps:$4 sm:$0xff]  }
 0x1a2   : > { %v668_v9 = vrot.slane %v661_v5, %v667_v58  ;;  %v2617_v15 = vpop.eup %2616  ;;  %v662_v16 = vmul.f32 %v2615_v8, %v3233_v4  ;;  %v2563_v5 = vld [vmem:[%s3093_s0 + $0x2c0] ss:$12 sps:$4 sm:$0xff]   ;;  %v2566_v8 = vld [vmem:[%s3093_s0 + $0x128] ss:$12 sps:$4 sm:$0xff]  }
 0x1a3   : > { %v676_v17 = vrot.slane %v663_v7, %v667_v58  ;;  %v664_v19 = vmul.f32 %v2617_v15, %v411_v6  ;;  %v2564_v6 = vld [vmem:[%s3093_s0 + $0x80] ss:$12 sps:$4 sm:$0xff]   ;;  %v2569_v15 = vld [vmem:[%s3093_s0 + $0x1e8] ss:$12 sps:$4 sm:$0xff]  }
 0x1a4   : > { %v681_v20 = vmul.f32 %v668_v9, %v3181_v62  ;;  %v685_v21 = vmul.f32 %v668_v9, %v3184_v63  ;;  %v672_v22 = vrot.slane %v662_v16, %v667_v58  ;;  %v2565_v7 = vld [vmem:[%s3093_s0 + $0x200] ss:$12 sps:$4 sm:$0xff]   ;;  %v2567_v9 = vld [vmem:[%s3093_s0 + $0x2a8] ss:$12 sps:$4 sm:$0xff]   ;;  %v2570_v16 = vld [vmem:[%s3093_s0 + $0x110] ss:$12 sps:$4 sm:$0xff]  }
 0x1a5   : > { %v683_v24 = vmul.f32 %v676_v17, %v3187_v0  ;;  %v687_v25 = vmul.f32 %v676_v17, %v3190_v1  ;;  %v680_v26 = vrot.slane %v664_v19, %v667_v58  ;;  %v2559_v58 = vld [vmem:[%s3093_s0 + $0x2d8] ss:$12 sps:$4 sm:$0xff]   ;;  %v2571_v17 = vld [vmem:[%s3093_s0 + $0x290] ss:$12 sps:$4 sm:$0xff]  }
 0x1a6   : > { %v705_v28 = vadd.f32 %v692_v14, %v681_v20  ;;  %v709_v29 = vadd.f32 %v692_v14, %v685_v21  ;;  %v682_v30 = vmul.f32 %v672_v22, %v3201_v10  ;;  %v686_v31 = vmul.f32 %v672_v22, %v3204_v11  ;;  %v2568_v14 = vld [vmem:[%s3093_s0 + $0x68] ss:$12 sps:$4 sm:$0xff]   ;;  %v2573_v19 = vld [vmem:[%s3093_s0 + $0x1d0] ss:$12 sps:$4 sm:$0xff]   ;;  %v2574_v20 = vld [vmem:[%s3093_s0 + $0xf8] ss:$12 sps:$4 sm:$0xff]  }
 0x1a7   : > { %v707_v32 = vadd.f32 %v700_v18, %v683_v24  ;;  %v711_v33 = vadd.f32 %v700_v18, %v687_v25  ;;  %v684_v62 = vmul.f32 %v680_v26, %v3207_v12  ;;  %v688_v63 = vmul.f32 %v680_v26, %v3210_v13  ;;  %v2572_v18 = vld [vmem:[%s3093_s0 + $0x50] ss:$12 sps:$4 sm:$0xff]   ;;  %v2575_v21 = vld [vmem:[%s3093_s0 + $0x278] ss:$12 sps:$4 sm:$0xff]   ;;  %v2578_v24 = vld [vmem:[%s3093_s0 + $0xe0] ss:$12 sps:$4 sm:$0xff]  }
 0x1a8   : > { %v713_v34 = vmax.f32 %v705_v28, 0.0  ;;  %v717_v35 = vmax.f32 %v709_v29, 0.0  ;;  %v706_v36 = vadd.f32 %v696_v23, %v682_v30  ;;  %v710_v0 = vadd.f32 %v696_v23, %v686_v31  ;;  %v2576_v22 = vld [vmem:[%s3093_s0 + $0x38] ss:$12 sps:$4 sm:$0xff]   ;;  %v2579_v25 = vld [vmem:[%s3093_s0 + $0x260] ss:$12 sps:$4 sm:$0xff]  }
 0x1a9   : > { %v715_v37 = vmax.f32 %v707_v32, 0.0  ;;  %v719_v1 = vmax.f32 %v711_v33, 0.0  ;;  %v708_v38 = vadd.f32 %v704_v27, %v684_v62  ;;  %v712_v39 = vadd.f32 %v704_v27, %v688_v63  ;;  %v2577_v23 = vld [vmem:[%s3093_s0 + $0x1b8] ss:$12 sps:$4 sm:$0xff]   ;;  %v2580_v26 = vld [vmem:[%s3093_s0 + $0x20] ss:$12 sps:$4 sm:$0xff]  }
 0x1aa   : > { %v714_v40 = vmax.f32 %v706_v36, 0.0  ;;  %v718_v10 = vmax.f32 %v710_v0, 0.0  ;;  %v721_v42 = vmul.f32 %v713_v34, %v3176_v46  ;;  %v725_v12 = vmul.f32 %v717_v35, %v3178_v61  ;;  %v2581_v27 = vld [vmem:[%s3093_s0 + $0x1a0] ss:$12 sps:$4 sm:$0xff]   ;;  %v2582_v28 = vld [vmem:[%s3093_s0 + $0xc8] ss:$12 sps:$4 sm:$0xff]  }
 0x1ab   : > { %v716_v41 = vmax.f32 %v708_v38, 0.0  ;;  %v720_v11 = vmax.f32 %v712_v39, 0.0  ;;  %v723_v44 = vmul.f32 %v715_v37, %v3176_v46  ;;  %v727_v45 = vmul.f32 %v719_v1, %v3178_v61  ;;  %v2583_v29 = vld [vmem:[%s3093_s0 + $0x248] ss:$12 sps:$4 sm:$0xff]   ;;  %v2586_v32 = vld [vmem:[%s3096_s30 + $0x78] sm:$0xff]   ;;  %v2592_v36 = vld [vmem:[%s3096_s30 + $0x60] sm:$0xff]  }
 0x1ac   : > { %v722_v13 = vmul.f32 %v714_v40, %v3176_v46  ;;  %v726_v43 = vmul.f32 %v718_v10, %v3178_v61  ;;  %v3258_v52 = vpack.c.bf16 %v725_v12, %v721_v42  ;;  %v2584_v30 = vld [vmem:[%s3093_s0 + $0x8] ss:$12 sps:$4 sm:$0xff]   ;;  %v2587_v33 = vld [vmem:[%s3096_s30 + $0x38] sm:$0xff]   ;;  %v2593_v0 = vld [vmem:[%s3096_s30 + $0x20] sm:$0xff]   ;;  %v2827_v12 = vmov 0.0  }
 0x1ad   : > { %v724_v47 = vmul.f32 %v716_v41, %v3176_v46  ;;  %v728_v48 = vmul.f32 %v720_v11, %v3178_v61  ;;  %v3261_v54 = vpack.c.bf16 %v727_v45, %v723_v44  ;;  %v2585_v31 = vld [vmem:[%s3093_s0 + $0x188] ss:$12 sps:$4 sm:$0xff]   ;;  %v2594_v37 = vld [vmem:[%s3096_s30 + $0x58] sm:$0xff]   ;;  %v2600_v41 = vld [vmem:[%s3096_s30 + $0x40] sm:$0xff]   ;;  %s3367_s0 = scalar_lea.hbm %s3417_s6, %s2269_s11 }
 0x1ae   : > { %v730_v49 = vpack.c.bf16 %v726_v43, %v722_v13  ;;  %v2588_v62 = vld [vmem:[%s3096_s30 + $0x70] sm:$0xff]   ;;  %v2590_v34 = vld [vmem:[%s3096_s30 + $0x68] sm:$0xff]   ;;  %v2595_v1 = vld [vmem:[%s3096_s30 + $0x18] sm:$0xff]  }
 0x1af   : > { %v732_v51 = vpack.c.bf16 %v728_v48, %v724_v47  ;;  %v2589_v63 = vld [vmem:[%s3096_s30 + $0x30] sm:$0xff]   ;;  %v2591_v35 = vld [vmem:[%s3096_s30 + $0x28] sm:$0xff]   ;;  %v2601_v11 = vld [vmem:[%s3096_s30] sm:$0xff]  }
 0x1b0   : > { %1405 = vmatprep.mubr.bf16.mxu0 %v730_v49  ;;  %v2596_v38 = vld [vmem:[%s3096_s30 + $0x50] sm:$0xff]   ;;  %v2598_v40 = vld [vmem:[%s3096_s30 + $0x48] sm:$0xff]   ;;  %v2602_v42 = vld [vmem:[%s3096_s30 + $0xb8] sm:$0xff]  }
 0x1b1   : > { %1448 = vmatprep.mubr.bf16.mxu1 %v732_v51  ;;  %1406 = vmatmul.mubr.bf16.vlgmr.msra.gmra.mxu0 %v3258_v52  ;;  %v2597_v39 = vld [vmem:[%s3096_s30 + $0x10] sm:$0xff]   ;;  %v2599_v10 = vld [vmem:[%s3096_s30 + $0x8] sm:$0xff]   ;;  %v2605_v44 = vld [vmem:[%s3096_s30 + $0xa0] sm:$0xff]  }
 0x1b2   : > { %1449 = vmatmul.mubr.bf16.vlgmr.msra.gmra.mxu1 %v3261_v54  ;;  %2271 = vmatpush3.bf16.msra.mxu0 %v2556_v50  ;;  %v2603_v13 = vld [vmem:[%s3096_s30 + $0xb0] sm:$0xff]   ;;  %v2604_v43 = vld [vmem:[%s3096_s30 + $0xa8] sm:$0xff]   ;;  %v2606_v45 = vld [vmem:[%s3096_s30 + $0x98] sm:$0xff]  }
 0x1b3   : > { %2293 = vmatpush3.bf16.msra.mxu1 %v2557_v53  ;;  %1491 = vmatprep.mubr.bf16.mxu0 %v730_v49  ;;  %v2607_v47 = vld [vmem:[%s3096_s30 + $0x90] sm:$0xff]   ;;  %v2608_v48 = vld [vmem:[%s3096_s30 + $0x88] sm:$0xff]   ;;  %v2609_v49 = vld [vmem:[%s3096_s30 + $0x80] sm:$0xff]   ;;  %s2740_s30 = scalar_lea.vmem %s3369_s26, 256 }
 0x1b4   : > { %1532 = vmatprep.mubr.bf16.mxu1 %v732_v51  ;;  %2272 = vmatprep.subr.bf16.mxu0 %v2558_v55  ;;  %p2741_p9 = scmp.ne.s32.totalorder %s3369_s26, %s2740_s30  ;;  %p2748_p11 = scmp.lt.s32.totalorder %s2746_s7, %s2740_s30 }
 0x1b5   : > { %2294 = vmatprep.subr.bf16.mxu1 %v2559_v58 }
 0x1b6   : > { %2273 = vmatpush3.bf16.msra.mxu0 %v2560_v59  ;;  %p2742_p2 = pnand %p2741_p9, %p3436_p0  ;;  %p2749_p13 = por %p2748_p11, %p2747_p10 }
 0x1b7   : > { %2295 = vmatpush3.bf16.msra.mxu1 %v2561_v2  ;;  %2274 = vmatprep.subr.bf16.mxu0 %v2562_v3 }
 0x1b8   : > { %2296 = vmatprep.subr.bf16.mxu1 %v2563_v5  ;;  %p2743_p3 = pneg %p2742_p2 }
 0x1ba   : > { %2275 = vmatpush3.bf16.msra.mxu0 %v2564_v6  ;;  %p2750_p6 = pnand %p2749_p13, %p2743_p3 }
 0x1bb   : > { %2297 = vmatpush3.bf16.msra.mxu1 %v2565_v7  ;;  %2276 = vmatprep.subr.bf16.mxu0 %v2566_v8 }
 0x1bc   : > { %2298 = vmatprep.subr.bf16.mxu1 %v2567_v9 }
 0x1be   : > { %2277 = vmatpush3.bf16.msra.mxu0 %v2568_v14 }
 0x1bf   : > { %2299 = vmatpush3.bf16.msra.mxu1 %v2569_v15  ;;  %2278 = vmatprep.subr.bf16.mxu0 %v2570_v16 }
 0x1c0   : > { %2300 = vmatprep.subr.bf16.mxu1 %v2571_v17 }
 0x1c2   : > { %2279 = vmatpush3.bf16.msra.mxu0 %v2572_v18 }
 0x1c3   : > { %2301 = vmatpush3.bf16.msra.mxu1 %v2573_v19  ;;  %2280 = vmatprep.subr.bf16.mxu0 %v2574_v20 }
 0x1c4   : > { %2302 = vmatprep.subr.bf16.mxu1 %v2575_v21 }
 0x1c6   : > { %2281 = vmatpush3.bf16.msra.mxu0 %v2576_v22 }
 0x1c7   : > { %2303 = vmatpush3.bf16.msra.mxu1 %v2577_v23  ;;  %2282 = vmatprep.subr.bf16.mxu0 %v2578_v24 }
 0x1c8   : > { %2304 = vmatprep.subr.bf16.mxu1 %v2579_v25 }
 0x1ca   : > { %2283 = vmatpush3.bf16.msra.mxu0 %v2580_v26 }
 0x1cb   : > { %2305 = vmatpush3.bf16.msra.mxu1 %v2581_v27  ;;  %2284 = vmatprep.subr.bf16.mxu0 %v2582_v28 }
 0x1cc   : > { %2306 = vmatprep.subr.bf16.mxu1 %v2583_v29 }
 0x1ce   : > { %2285 = vmatpush3.bf16.msra.mxu0 %v2584_v30 }
 0x1cf   : > { %2307 = vmatpush3.bf16.msra.mxu1 %v2585_v31  ;;  %2314 = vmatprep.subr.bf16.mxu0 %v2586_v32 }
 0x1d0   : > { %2345 = vmatprep.subr.bf16.mxu1 %v2827_v12 }
 0x1d1   : > { %1492 = vmatmul.mubr.bf16.vlgmr.msra.gmra.mxu0 %v3258_v52 }
 0x1d2   : > { %1533 = vmatmul.mubr.bf16.vlgmr.msra.gmra.mxu1 %v3261_v54  ;;  %2315 = vmatpush3.bf16.msra.mxu0 %v2587_v33 }
 0x1d3   : > { %2316 = vmatprep.subr.bf16.mxu0 %v2588_v62  ;;  %2346 = vmatpush3.bf16.msra.mxu1 %v2602_v42 }
 0x1d4   : > { %2347 = vmatprep.subr.bf16.mxu1 %v2827_v12  ;;  %2361 = vmatprep.mubr.msk.bf16.mxu1 %vm2828_vm1, %v2827_v12 }
 0x1d6   : > { %2317 = vmatpush3.bf16.msra.mxu0 %v2589_v63 }
 0x1d7   : > { %2318 = vmatprep.subr.bf16.mxu0 %v2590_v34  ;;  %2348 = vmatpush3.bf16.msra.mxu1 %v2603_v13 }
 0x1d8   : > { %2349 = vmatprep.subr.bf16.mxu1 %v2827_v12 }
 0x1da   : > { %2319 = vmatpush3.bf16.msra.mxu0 %v2591_v35 }
 0x1db   : > { %2320 = vmatprep.subr.bf16.mxu0 %v2592_v36  ;;  %2350 = vmatpush3.bf16.msra.mxu1 %v2604_v43 }
 0x1dc   : > { %2351 = vmatprep.subr.bf16.mxu1 %v2827_v12 }
 0x1de   : > { %2321 = vmatpush3.bf16.msra.mxu0 %v2593_v0 }
 0x1df   : > { %2322 = vmatprep.subr.bf16.mxu0 %v2594_v37  ;;  %2352 = vmatpush3.bf16.msra.mxu1 %v2605_v44 }
 0x1e0   : > { %2353 = vmatprep.subr.bf16.mxu1 %v2827_v12 }
 0x1e2   : > { %2323 = vmatpush3.bf16.msra.mxu0 %v2595_v1 }
 0x1e3   : > { %2324 = vmatprep.subr.bf16.mxu0 %v2596_v38  ;;  %2354 = vmatpush3.bf16.msra.mxu1 %v2606_v45 }
 0x1e4   : > { %2355 = vmatprep.subr.bf16.mxu1 %v2827_v12 }
 0x1e6   : > { %2325 = vmatpush3.bf16.msra.mxu0 %v2597_v39 }
 0x1e7   : > { %2326 = vmatprep.subr.bf16.mxu0 %v2598_v40  ;;  %2356 = vmatpush3.bf16.msra.mxu1 %v2607_v47 }
 0x1e8   : > { %2357 = vmatprep.subr.bf16.mxu1 %v2827_v12 }
 0x1ea   : > { %2327 = vmatpush3.bf16.msra.mxu0 %v2599_v10 }
 0x1eb   : > { %2328 = vmatprep.subr.bf16.mxu0 %v2600_v41  ;;  %2358 = vmatpush3.bf16.msra.mxu1 %v2608_v48 }
 0x1ec   : > { %2359 = vmatprep.subr.bf16.mxu1 %v2827_v12 }
 0x1ee   : > { %2329 = vmatpush3.bf16.msra.mxu0 %v2601_v11 }
 0x1ef   : > { %2360 = vmatpush3.bf16.msra.mxu1 %v2609_v49 }
 0x271   : > { %v1407_v50 = vpop.f32.mrf.mxu0 }
 0x272   : > { %v1450_v51 = vpop.f32.mrf.mxu1 }
 0x273   : > { %v1409_v52 = vpop.f32.mrf.mxu0  ;;  %v1451_v58 = vadd.f32 %v1450_v51, %v1407_v50 }
 0x274   : > { %v1452_v53 = vpop.f32.mrf.mxu1 }
 0x275   : > { %v1411_v54 = vpop.f32.mrf.mxu0  ;;  %v1453_v5 = vadd.f32 %v1452_v53, %v1409_v52 }
 0x276   : > { %v1454_v55 = vpop.f32.mrf.mxu1 }
 0x277   : > { %v1455_v59 = vadd.f32 %v1454_v55, %v1411_v54  ;;  %v1413_v2 = vpop.f32.mrf.mxu0 }
 0x278   : > { %v1456_v3 = vpop.f32.mrf.mxu1 }
 0x279   : > { %v1541_v6 = vadd.f32 %v1455_v59, %v1451_v58  ;;  %v1457_v7 = vadd.f32 %v1456_v3, %v1413_v2 }
 0x27b   : > { %v1542_v8 = vrot.slane %v1541_v6, 4  ;;  %v1548_v9 = vadd.f32 %v1457_v7, %v1453_v5 }
 0x27d   : > { %v1543_v14 = vadd.f32 %v1542_v8, %v1541_v6  ;;  %v1549_v15 = vrot.slane %v1548_v9, 4 }
 0x27f   : > { %v1544_v16 = vrot.slane %v1543_v14, 2  ;;  %v1550_v17 = vadd.f32 %v1549_v15, %v1548_v9 }
 0x281   : > { %v1545_v18 = vadd.f32 %v1544_v16, %v1543_v14  ;;  %v1551_v19 = vrot.slane %v1550_v17, 2 }
 0x283   : > { %v1546_v20 = vrot.slane %v1545_v18, 1  ;;  %v1552_v21 = vadd.f32 %v1551_v19, %v1550_v17 }
 0x285   : > { %v1547_v22 = vadd.f32 %v1546_v20, %v1545_v18  ;;  %v1553_v23 = vrot.slane %v1552_v21, 1 }
 0x287   : > { %v1562_v24 = vmul.f32 0.125, %v1547_v22  ;;  %v1554_v25 = vadd.f32 %v1553_v23, %v1552_v21  ;;  %v1636_v21 = vsub.s32 3, %v3225_v56  ;;  %v1618_v22 = vsub.s32 2, %v3225_v56 }
 0x289   : > { %v1565_v26 = vsub.f32 %v1451_v58, %v1562_v24  ;;  %v1568_v27 = vsub.f32 %v1455_v59, %v1562_v24  ;;  %v1563_v28 = vmul.f32 0.125, %v1554_v25 }
 0x28b   : > { %v3320_v29 = vmul.f32 %v1565_v26, %v3176_v46  ;;  %v3323_v30 = vmul.f32 %v1568_v27, %v3178_v61  ;;  %v1566_v31 = vsub.f32 %v1453_v5, %v1563_v28  ;;  %v1569_v32 = vsub.f32 %v1457_v7, %v1563_v28 }
 0x28d   : > { %v1577_v33 = vmul.f32 %v3320_v29, %v3320_v29  ;;  %v1580_v62 = vmul.f32 %v3323_v30, %v3323_v30  ;;  %v3330_v63 = vmul.f32 %v1566_v31, %v3176_v46  ;;  %v3333_v34 = vmul.f32 %v1569_v32, %v3178_v61 }
 0x28e   : > { %v1637_v32 = vrot.slane %v3227_v57, %v1636_v21 }
 0x28f   : > { %v1583_v35 = vadd.f32 %v1580_v62, %v1577_v33  ;;  %v1578_v36 = vmul.f32 %v3330_v63, %v3330_v63  ;;  %v1581_v0 = vmul.f32 %v3333_v34, %v3333_v34 }
 0x291   : > { %v1584_v37 = vrot.slane %v1583_v35, 4  ;;  %v1590_v1 = vadd.f32 %v1581_v0, %v1578_v36  ;;  %v2286_v38 = vpop.f32.mrf.mxu0  ;;  %v1641_v0 = vrot.slane %v3233_v4, %v1636_v21 }
 0x292   : > { %v2308_v39 = vpop.f32.mrf.mxu1 }
 0x293   : > { %v1585_v40 = vadd.f32 %v1584_v37, %v1583_v35  ;;  %v1591_v10 = vrot.slane %v1590_v1, 4  ;;  %v2287_v41 = vpop.f32.mrf.mxu0 }
 0x294   : > { %v2309_v11 = vpop.f32.mrf.mxu1  ;;  %v2288_v47 = vadd.f32 %v2287_v41, %v2286_v38 }
 0x295   : > { %v1586_v42 = vrot.slane %v1585_v40, 2  ;;  %v1592_v12 = vadd.f32 %v1591_v10, %v1590_v1  ;;  %v2289_v13 = vpop.f32.mrf.mxu0  ;;  %v2310_v48 = vadd.f32 %v2309_v11, %v2308_v39 }
 0x296   : > { %v2311_v43 = vpop.f32.mrf.mxu1 }
 0x297   : > { %v1587_v44 = vadd.f32 %v1586_v42, %v1585_v40  ;;  %v1593_v45 = vrot.slane %v1592_v12, 2  ;;  %v2290_v49 = vpop.f32.mrf.mxu0  ;;  %v1535_v59 = vadd.f32 %v2310_v48, %v2288_v47 }
 0x298   : > { %v2291_v50 = vadd.f32 %v2290_v49, %v2289_v13  ;;  %v2312_v51 = vpop.f32.mrf.mxu1 }
 0x299   : > { %v1588_v52 = vrot.slane %v1587_v44, 1  ;;  %v1594_v53 = vadd.f32 %v1593_v45, %v1592_v12  ;;  %v2313_v54 = vadd.f32 %v2312_v51, %v2311_v43 }
 0x29b   : > { %v1589_v55 = vadd.f32 %v1588_v52, %v1587_v44  ;;  %v1595_v58 = vrot.slane %v1594_v53, 1  ;;  %v1538_v2 = vadd.f32 %v2313_v54, %v2291_v50 }
 0x29d   : > { %v1604_v3 = vmul.f32 0.125, %v1589_v55  ;;  %v1596_v5 = vadd.f32 %v1595_v58, %v1594_v53  ;;  %v1555_v6 = vadd.f32 %v1538_v2, %v1535_v59 }
 0x29f   : > { %v1607_v7 = vadd.f32 1e-05, %v1604_v3  ;;  %v1605_v8 = vmul.f32 0.125, %v1596_v5  ;;  %v1556_v9 = vrot.slane %v1555_v6, 4  ;;  %v1645_v3 = vrot.slane %v3231_v60, %v1636_v21 }
 0x2a1   : > { %2618 = vrsqrt.f32 %v1607_v7  ;;  %v1608_v14 = vadd.f32 1e-05, %v1605_v8  ;;  %v1557_v15 = vadd.f32 %v1556_v9, %v1555_v6 }
 0x2a3   : > { %2620 = vrsqrt.f32 %v1608_v14  ;;  %v1558_v16 = vrot.slane %v1557_v15, 2 }
 0x2a5   : > { %v1559_v17 = vadd.f32 %v1558_v16, %v1557_v15 }
 0x2a7   : > { %v1560_v18 = vrot.slane %v1559_v17, 1 }
 0x2a9   : > { %v1561_v19 = vadd.f32 %v1560_v18, %v1559_v17 }
 0x2ab   : > { %v1564_v20 = vmul.f32 0.125, %v1561_v19 }
 0x2ad   : > { %v1567_v23 = vsub.f32 %v1535_v59, %v1564_v20  ;;  %v1570_v24 = vsub.f32 %v1538_v2, %v1564_v20  ;;  %v1717_v20 = vsub.s32 4, %v3225_v56 }
 0x2ae   : > { %v2619_v25 = vpop.eup %2618 }
 0x2af   : > { %v1613_v26 = vmul.f32 %v2619_v25, %v3227_v57  ;;  %v1573_v27 = vmul.f32 %v1567_v23, %v3176_v46  ;;  %v1576_v28 = vmul.f32 %v1570_v24, %v3178_v61  ;;  %v1718_v21 = vrot.slane %v3227_v57, %v1717_v20 }
 0x2b0   : > { %v2621_v31 = vpop.eup %2620 }
 0x2b1   : > { %v1619_v33 = vrot.slane %v1613_v26, %v1618_v22  ;;  %v1614_v62 = vmul.f32 %v2621_v31, %v3233_v4  ;;  %v1579_v35 = vmul.f32 %v1573_v27, %v1573_v27  ;;  %v1582_v36 = vmul.f32 %v1576_v28, %v1576_v28 }
 0x2b3   : > { %v1628_v37 = vmul.f32 %v1619_v33, %v3320_v29  ;;  %v1631_v1 = vmul.f32 %v1619_v33, %v3323_v30  ;;  %v1623_v38 = vrot.slane %v1614_v62, %v1618_v22  ;;  %v1597_v39 = vadd.f32 %v1582_v36, %v1579_v35 }
 0x2b5   : > { %v1649_v40 = vadd.f32 %v1637_v32, %v1631_v1  ;;  %v1632_v10 = vmul.f32 %v1623_v38, %v3333_v34  ;;  %v1598_v41 = vrot.slane %v1597_v39, 4  ;;  %v1629_v11 = vmul.f32 %v1623_v38, %v3330_v63 }
 0x2b6   : > { %v1646_v42 = vadd.f32 %v1637_v32, %v1628_v37 }
 0x2b7   : > { %v1655_v12 = vmax.f32 %v1649_v40, 0.0  ;;  %v1599_v13 = vadd.f32 %v1598_v41, %v1597_v39  ;;  %v1647_v43 = vadd.f32 %v1641_v0, %v1629_v11  ;;  %v1650_v44 = vadd.f32 %v1641_v0, %v1632_v10 }
 0x2b8   : > { %v1652_v45 = vmax.f32 %v1646_v42, 0.0 }
 0x2b9   : > { %v1600_v47 = vrot.slane %v1599_v13, 2  ;;  %v1653_v4 = vmax.f32 %v1647_v43, 0.0  ;;  %v1656_v48 = vmax.f32 %v1650_v44, 0.0  ;;  %v1661_v30 = vmul.f32 %v1655_v12, %v3178_v61 }
 0x2ba   : > { %v1658_v29 = vmul.f32 %v1652_v45, %v3176_v46 }
 0x2bb   : > { %v1601_v49 = vadd.f32 %v1600_v47, %v1599_v13  ;;  %v1659_v50 = vmul.f32 %v1653_v4, %v3176_v46  ;;  %v1662_v34 = vmul.f32 %v1656_v48, %v3178_v61 }
 0x2bc   : > { %v1664_v52 = vpack.c.bf16 %v1661_v30, %v1658_v29 }
 0x2bd   : > { %v1602_v51 = vrot.slane %v1601_v49, 1  ;;  %v1665_v63 = vpack.c.bf16 %v1662_v34, %v1659_v50 }
 0x2bf   : > { %v1603_v53 = vadd.f32 %v1602_v51, %v1601_v49  ;;  %1895 = vmatprep.mubr.bf16.mxu0 %v1665_v63 }
 0x2c0   : > { %1896 = vmatmul.mubr.bf16.vlgmr.msra.gmra.mxu0 %v1664_v52 }
 0x2c1   : > { %v1606_v54 = vmul.f32 0.125, %v1603_v53 }
 0x2c3   : > { %v1609_v55 = vadd.f32 1e-05, %v1606_v54 }
 0x2c5   : > { %2622 = vrsqrt.f32 %v1609_v55 }
 0x2d2   : > { %v2623_v58 = vpop.eup %2622 }
 0x2d3   : > { %v1615_v59 = vmul.f32 %v2623_v58, %v3231_v60 }
 0x2d5   : > { %v1627_v2 = vrot.slane %v1615_v59, %v1618_v22 }
 0x2d7   : > { %v1630_v5 = vmul.f32 %v1627_v2, %v1573_v27  ;;  %v1633_v6 = vmul.f32 %v1627_v2, %v1576_v28 }
 0x2d9   : > { %v1651_v7 = vadd.f32 %v1645_v3, %v1633_v6  ;;  %v1648_v8 = vadd.f32 %v1645_v3, %v1630_v5 }
 0x2db   : > { %v1657_v9 = vmax.f32 %v1651_v7, 0.0  ;;  %v1654_v14 = vmax.f32 %v1648_v8, 0.0 }
 0x2dd   : > { %v1660_v15 = vmul.f32 %v1654_v14, %v3176_v46  ;;  %v1663_v16 = vmul.f32 %v1657_v9, %v3178_v61 }
 0x2df   : > { %v1666_v17 = vpack.c.bf16 %v1663_v16, %v1660_v15 }
 0x2e1   : > { %2362 = vmatmul.mubr.bf16.vlgmr.msra.gmra.mxu1 %v1666_v17 }
 0x380   : > { %v2330_v18 = vpop.f32.mrf.mxu0 }
 0x382   : > { %v2331_v19 = vpop.f32.mrf.mxu0 }
 0x383   : > { %v2332_v60 = vadd.f32 %v2331_v19, %v2330_v18 }
 0x384   : > { %v2333_v22 = vpop.f32.mrf.mxu0 }
 0x385   : > { %v1898_v25 = vadd.f32 %v2332_v60, %v1718_v21 }
 0x386   : > { %v2334_v23 = vpop.f32.mrf.mxu0 }
 0x387   : > { %v2335_v24 = vadd.f32 %v2334_v23, %v2333_v22 }
 0x389   : > { %v1901_v61 = vadd.f32 %v2335_v24, %v1718_v21 }
 0x3a1   : > { %v1938_v26 = vpop.f32.mrf.mxu1 }
 0x3a2   : > { %v1939_v27 = vadd.f32 %v1938_v26, %v1898_v25 }
 0x3a3   : > { %v2363_v46 = vpop.f32.mrf.mxu1 }
 0x3a4   : > { %2624 = vtanh.f32 %v1939_v27 }
 0x3a5   : > { %v1941_v28 = vpop.f32.mrf.mxu1 }
 0x3a6   : > { %v1942_v31 = vadd.f32 %v1941_v28, %v1901_v61 }
 0x3a7   : > { %v2364_v32 = vpop.f32.mrf.mxu1 }
 0x3a8   : > { %2626 = vtanh.f32 %v1942_v31 }
 0x3b1   : > { %v2625_v56 = vpop.eup %2624 }
 0x3b2   : > { %1947 = vst [vmem:[%s401_s12] sm:$0xff] %v2625_v56 }
 0x3b5   : > { %v2627_v57 = vpop.eup %2626 }
 0x3b6   : > { %1948 = vst [vmem:[%s401_s12 + $0x8] sm:$0xff] %v2627_v57 }
 0x3b7   : > { %2753 = shalt.err (!%p2750_p6)
}
 0x3b8   : > { %s2754_s14 = scalar_lea.hbm %s3367_s0, 256  ;;  %s2758_s18 = scalar_lea.hbm %s3417_s6, 768 }
 0x3b9   : > { %p2755_p4 = scmp.ne.s32.totalorder %s3367_s0, %s2754_s14  ;;  %p2759_p1 = scmp.lt.s32.totalorder %s3367_s0, %s3417_s6 }
 0x3ba   : > { %p2760_p8 = scmp.lt.s32.totalorder %s2758_s18, %s2754_s14 }
 0x3bb   : > { %p2756_p5 = pnand %p2755_p4, %p3436_p0 }
 0x3bc   : > { %p2761_p12 = por %p2760_p8, %p2759_p1 }
 0x3bd   : > { %p2757_p7 = pneg %p2756_p5 }
 0x3bf   : > { %p2762_p9 = pnand %p2761_p12, %p2757_p7 }
 0x3c1   : > { %2765 = shalt.err (!%p2762_p9)
}
 0x3c2   : > { %s2830_s13 = smov 128   ;;  %s2831_s10 = smov 8  }
 0x3c3   : > { %2379 = dma.vmem_to_hbm [thread:$0]  (%p3436_p0), %s3369_s26, 256, %s3367_s0, %s1950_s23, %s2830_s13, %s2830_s13, %s2831_s10  }
 0x3c4 PF: > { %p2399_p2 = scmp.ge.s32.totalorder %s2812_s24, 2  ;;  %s1978_s11 = sand.u32 1, %s2800_s21  }
 0x3c5   : > { %p3437_p3 = scmp.ne.s32.totalorder %s3427_s9, 0  ;;  %s1979_s12 = scalar_lea.sflag [#allocation4], %s1978_s11 }
 0x3c7   : > { %p2395_p10 = pnand %p2399_p2, %p3437_p3 }
 0x3c9   : > { %p2396_p11 = pneg %p2395_p10 }
 0x3cb   : > { %2795 = dma.done.wait (%p2396_p11), %s1979_s12, 256  }
 0x3cc   : > { %2797 = vsyncadd (%p2396_p11), %s1979_s12, 4294967040  ;;  %s3438_s16 = sld [smem:[#allocation15_spill]]  ;;  %p25_p13 = scmp.ge.s32.totalorder %s2892_s27, 5  }
 0x3cd   : > { %s3439_s23 = sld [smem:[#allocation16_spill]]  ;;  %s3440_s21 = smov %s2804_s22 }
 0x3ce   : > { %s3442_s24 = smov %s2892_s27  ;;  %27 = sbr.rel (!%p25_p13) target bundleno = 12 (0xc), region = 129 }
 0x3d2   : > { %s3441_s22 = smov %s3438_s16 }
 0x3d3   :  { %1984 = vsyncpa [#allocation3], 1 }
 0x3d4   :  { %1986 = vsyncpa [#allocation3 + $0x1], 1 }
 0x3d5   :  { %1987 = vsyncpa [#allocation6], 1 }
 0x3d6   :  { %1989 = vsyncpa [#allocation6 + $0x1], 1 }
 0x3d7   :  { %1990 = vsyncpa [#allocation9], 1 }
 0x3d8   :  { %1992 = vsyncpa [#allocation9 + $0x1], 1 }
 0x3d9   :  { %1993 = vsyncpa [#allocation4], 1 }
 0x3da   :  { %1995 = vsyncpa [#allocation4 + $0x1], 1 }

</bundles_post_ra>
